<compile_context>
chip_gen: v6e
topology: v6e:2x2x1
jax: 0.10.0
libtpu: 0.0.40
codegen_flags: <defaults>
</compile_context>

<pallas_src>
import functools

import jax
import jax.numpy as jnp
from jax.experimental import pallas as pl
from jax.experimental.pallas import tpu as pltpu

LANE = 128


def _round_up(x, m):
    return (x + m - 1) // m * m


def _pad_to(a, rows, cols):
    r, c = a.shape
    return jnp.pad(a, ((0, rows - r), (0, cols - c)))


# --------------------------------------------------------------------------------------
# Tiled per-layer kernel:  out = prelu( (A @ X) * (1/deg) @ Wl  +  X @ Wr  + b )
# --------------------------------------------------------------------------------------
def _sage_prelu_kernel(a_ref, dinv_ref, xk_ref, xi_ref, wl_ref, wr_ref, b_ref, al_ref,
                       o_ref, acc_ref):
    """One (row-tile, k-tile) step.

    a_ref    : (bm, bk)   int8  un-normalized edge counts (rows i, neighbor cols k)
    dinv_ref : (bm, 1)    f32   reciprocal in-degree (0 for padded/isolated rows)
    xk_ref   : (bk, cp)   bf16  neighbor-node features
    xi_ref   : (bm, cp)   bf16  root-node features (constant across k)
    wl_ref   : (cp, hp)   bf16  lin_l.weight^T
    wr_ref   : (cp, hp)   bf16  lin_r.weight^T
    b_ref    : (1, hp)    f32   lin_l bias
    al_ref   : (1, hp)    f32   PReLU per-channel slope
    o_ref    : (bm, hp)   bf16  output (resident across the k axis)
    acc_ref  : (bm, cp)   f32   running sum_k A_tile @ X_tile
    """
    k = pl.program_id(1)

    @pl.when(k == 0)
    def _init():
        acc_ref[...] = jnp.zeros_like(acc_ref)

    # Neighbor-sum accumulation: int8 counts cast to bf16 (exact, free VPU filler
    # under a DMA-bound loop), MXU matmul with f32 accumulation.
    acc_ref[...] += jnp.dot(a_ref[...].astype(jnp.bfloat16), xk_ref[...],
                            preferred_element_type=jnp.float32)

    @pl.when(k == pl.num_programs(1) - 1)
    def _finalize():
        # Mean = sum * (1/deg), applied once per row tile in f32.
        agg = (acc_ref[...] * dinv_ref[...]).astype(jnp.bfloat16)
        h = (jnp.dot(agg, wl_ref[...], preferred_element_type=jnp.float32)
             + jnp.dot(xi_ref[...], wr_ref[...], preferred_element_type=jnp.float32)
             + b_ref[...])
        # Per-channel PReLU epilogue (only once per row tile).
        o_ref[...] = jnp.where(h > 0.0, h, al_ref[...] * h).astype(o_ref.dtype)


def _layer_vmem_limit(block_m, block_k, cp, hp):
    """VMEM budget derived from actual buffer sizes (double-buffered pipeline + scratch),
    with generous margin; kept well under the v7x 64 MiB physical cap."""
    buf = (block_m * block_k * 1          # A tile (int8)
           + block_m * 1 * 4              # 1/deg tile
           + block_k * cp * 2             # X neighbors (bf16)
           + block_m * cp * 2             # X roots (bf16)
           + 2 * cp * hp * 2              # Wl + Wr (bf16)
           + 2 * hp * 4                   # bias + alpha (f32)
           + block_m * hp * 2)            # output tile (bf16)
    total = 2 * buf + block_m * cp * 4    # double-buffering + f32 accumulator scratch
    return int(min(max(4 * total, 16 * 1024 * 1024), 48 * 1024 * 1024))


def sage_prelu_layer(adj_i8, dinv, x_b, wl, wr, bias, alpha, *, block_m=256, block_k=256):
    """One SAGEConv(mean) + PReLU layer on padded, lane-dense inputs.

    adj_i8 : [Np, Np]  int8  un-normalized edge counts (zero-padded)
    dinv   : [Np, 1]   f32   reciprocal in-degree (0 on padded rows)
    x_b    : [Np, Cp]  bf16  node features (zero-padded channels)
    wl/wr  : [Cp, Hp]  bf16  lin_l.weight^T / lin_r.weight^T (zero-padded)
    bias   : [1, Hp]   f32
    alpha  : [1, Hp]   f32
    returns [Np, Hp] bf16
    """
    np_, cp = x_b.shape
    hp = wl.shape[1]
    assert np_ % block_m == 0 and np_ % block_k == 0
    grid = (np_ // block_m, np_ // block_k)

    return pl.pallas_call(
        _sage_prelu_kernel,
        out_shape=jax.ShapeDtypeStruct((np_, hp), jnp.bfloat16),
        grid_spec=pltpu.PrefetchScalarGridSpec(
            num_scalar_prefetch=0,
            grid=grid,
            in_specs=[
                pl.BlockSpec((block_m, block_k), lambda i, k: (i, k)),  # A counts (int8)
                pl.BlockSpec((block_m, 1),       lambda i, k: (i, 0)),  # 1/deg
                pl.BlockSpec((block_k, cp),      lambda i, k: (k, 0)),  # X (neighbors)
                pl.BlockSpec((block_m, cp),      lambda i, k: (i, 0)),  # X (roots)
                pl.BlockSpec((cp, hp),           lambda i, k: (0, 0)),  # Wl
                pl.BlockSpec((cp, hp),           lambda i, k: (0, 0)),  # Wr
                pl.BlockSpec((1, hp),            lambda i, k: (0, 0)),  # bias
                pl.BlockSpec((1, hp),            lambda i, k: (0, 0)),  # PReLU alpha
            ],
            out_specs=pl.BlockSpec((block_m, hp), lambda i, k: (i, 0)),
            scratch_shapes=[pltpu.VMEM((block_m, cp), jnp.float32)],
        ),
        compiler_params=pltpu.CompilerParams(
            # Row tiles can be split across TensorCores; the reduction axis carries the
            # accumulator so it must stay arbitrary (and last, by convention).
            dimension_semantics=("parallel", "arbitrary"),
            vmem_limit_bytes=_layer_vmem_limit(block_m, block_k, cp, hp),
        ),
    )(adj_i8, dinv, x_b, x_b, wl, wr, bias, alpha)


# --------------------------------------------------------------------------------------
# Fully fused kernel for small graphs: A, X and all layer weights resident in VMEM,
# in-kernel loop over layers (A read from HBM exactly once for the whole encoder).
# --------------------------------------------------------------------------------------
def _fused_encoder_kernel(*refs, num_layers):
    a_ref, dinv_ref, x_ref = refs[0], refs[1], refs[2]
    layer_refs = refs[3:3 + 4 * num_layers]
    o_ref = refs[3 + 4 * num_layers]

    a = a_ref[...].astype(jnp.bfloat16)   # small-integer edge counts: exact in bf16
    dinv = dinv_ref[...]                  # [Np, 1] f32
    x = x_ref[...]                        # [Np, Cp0] bf16

    for li in range(num_layers):          # static Python loop (traced once)
        wl_ref, wr_ref, b_ref, al_ref = layer_refs[4 * li:4 * li + 4]
        agg = (jnp.dot(a, x, preferred_element_type=jnp.float32) * dinv
               ).astype(jnp.bfloat16)
        h = (jnp.dot(agg, wl_ref[...], preferred_element_type=jnp.float32)
             + jnp.dot(x, wr_ref[...], preferred_element_type=jnp.float32)
             + b_ref[...])
        x = jnp.where(h > 0.0, h, al_ref[...] * h).astype(jnp.bfloat16)

    o_ref[...] = x


def _fused_vmem_limit(np_, cp0, hp, num_layers):
    cmax = max(cp0, hp)
    total = (np_ * np_ * (1 + 2)                 # A: int8 input + in-kernel bf16 copy
             + np_ * 4                           # 1/deg
             + np_ * cmax * (2 + 2 + 4 * 3)      # x in/out (bf16) + a few f32 temporaries
             + num_layers * (2 * cmax * hp * 2 + 2 * hp * 4))
    return int(min(max(4 * total, 16 * 1024 * 1024), 48 * 1024 * 1024))


def fused_encoder(adj_i8, dinv, x_b, packed):
    np_ = adj_i8.shape[0]
    num_layers = len(packed)
    hp = packed[-1][0].shape[1]

    flat_w = []
    in_specs = [
        pl.BlockSpec(adj_i8.shape, lambda i: (0, 0)),
        pl.BlockSpec(dinv.shape,   lambda i: (0, 0)),
        pl.BlockSpec(x_b.shape,    lambda i: (0, 0)),
    ]
    for (wl, wr, b, al) in packed:
        for arr in (wl, wr, b, al):
            flat_w.append(arr)
            in_specs.append(pl.BlockSpec(arr.shape, lambda i: (0, 0)))

    kernel = functools.partial(_fused_encoder_kernel, num_layers=num_layers)
    return pl.pallas_call(
        kernel,
        out_shape=jax.ShapeDtypeStruct((np_, hp), jnp.bfloat16),
        grid_spec=pltpu.PrefetchScalarGridSpec(
            num_scalar_prefetch=0,
            grid=(1,),
            in_specs=in_specs,
            out_specs=pl.BlockSpec((np_, hp), lambda i: (0, 0)),
            scratch_shapes=[],
        ),
        compiler_params=pltpu.CompilerParams(
            dimension_semantics=("arbitrary",),
            vmem_limit_bytes=_fused_vmem_limit(np_, x_b.shape[1], hp, num_layers),
        ),
    )(adj_i8, dinv, x_b, *flat_w)


# --------------------------------------------------------------------------------------
# Host-side glue
# --------------------------------------------------------------------------------------
def edge_index_to_counts(edge_index, num_nodes):
    """Dense edge-count matrix (counts duplicates, like scatter-mean) and 1/in-degree.

    edge_index[0] = source nodes, edge_index[1] = target nodes (flow source->target).
    """
    src, tgt = edge_index[0], edge_index[1]
    counts = jnp.zeros((num_nodes, num_nodes), jnp.float32)
    counts = counts.at[tgt, src].add(1.0)
    deg = counts.sum(axis=1, keepdims=True)
    dinv = 1.0 / jnp.where(deg > 0.0, deg, 1.0)
    return counts, dinv


def init_encoder_params(key, in_channels, hidden_channels, num_layers):
    """Deterministic synthetic params matching SAGEConv + PReLU shapes (f32 masters)."""
    params = []
    for i in range(num_layers):
        c_in = in_channels if i == 0 else hidden_channels
        key, k1, k2, k3 = jax.random.split(key, 4)
        scale = 1.0 / jnp.sqrt(jnp.float32(c_in))
        w_l = jax.random.uniform(k1, (c_in, hidden_channels), jnp.float32,
                                 -scale, scale)   # lin_l.weight^T
        w_r = jax.random.uniform(k2, (c_in, hidden_channels), jnp.float32,
                                 -scale, scale)   # lin_r.weight^T
        b = jax.random.uniform(k3, (1, hidden_channels), jnp.float32,
                               -scale, scale)     # lin_l.bias
        alpha = jnp.full((1, hidden_channels), 0.25, jnp.float32)  # PReLU init
        params.append((w_l, w_r, b, alpha))
    return params


def pack_encoder_params(params):
    """Pad channels to 128 lanes; weights bf16, bias/alpha f32."""
    packed = []
    for (w_l, w_r, b, alpha) in params:
        c, h = w_l.shape
        cp = _round_up(c, LANE)
        hp = _round_up(h, LANE)
        packed.append((
            _pad_to(w_l, cp, hp).astype(jnp.bfloat16),
            _pad_to(w_r, cp, hp).astype(jnp.bfloat16),
            _pad_to(b, 1, hp).astype(jnp.float32),
            _pad_to(alpha, 1, hp).astype(jnp.float32),
        ))
    return packed


def encoder_forward(params, x, edge_index, *, block_m=256, block_k=256, fuse_layers=None):
    n, _ = x.shape
    h_out = params[-1][0].shape[1]
    packed = pack_encoder_params(params)

    np_ = _round_up(n, max(block_m, block_k))

    counts, dinv = edge_index_to_counts(edge_index, n)
    # NOTE: padded rows/cols of A stay all-zero and their 1/deg is 0, so fake nodes can
    # never contaminate real nodes (their outputs become prelu(bias) and are sliced off).
    # int8 holds exact per-pair edge counts up to 127 (fine for these graphs).
    adj_i8 = _pad_to(counts, np_, np_).astype(jnp.int8)
    dinv_p = _pad_to(dinv, np_, 1).astype(jnp.float32)

    cp0 = packed[0][0].shape[0]
    xb = _pad_to(x, np_, cp0).astype(jnp.bfloat16)

    if fuse_layers is None:
        # Fuse when A (int8 + in-kernel bf16 copy) comfortably fits VMEM (v7x: 64 MiB).
        fuse_layers = (np_ * np_ * 3) <= 24 * 1024 * 1024

    if fuse_layers:
        xb = fused_encoder(adj_i8, dinv_p, xb, packed)
    else:
        for (wl, wr, b_p, a_p) in packed:
            assert xb.shape[1] == wl.shape[0]
            xb = sage_prelu_layer(adj_i8, dinv_p, xb, wl, wr, b_p, a_p,
                                  block_m=block_m, block_k=block_k)
    return xb[:n, :h_out].astype(jnp.float32)


def ref_forward(params, x, edge_index):
    """Pure-JAX reference mimicking the kernel's quantization points."""
    def q(a):
        return a.astype(jnp.bfloat16).astype(jnp.float32)

    counts, dinv = edge_index_to_counts(edge_index, x.shape[0])
    xx = q(x)
    for (w_l, w_r, b, alpha) in params:
        wl, wr = q(w_l), q(w_r)
        agg = q((counts @ xx) * dinv)     # exact counts, f32 accumulate + f32 1/deg, bf16 store
        h = agg @ wl + xx @ wr + b
        xx = q(jnp.where(h > 0.0, h, alpha * h))   # kernel stores activations in bf16
    return xx


if __name__ == "__main__":
    N = 500            # nodes -> padded to 512 -> 2x2 grid of 256-tiles (2 row tiles)
    IN_CHANNELS = 12
    HIDDEN = 32
    NUM_LAYERS = 2
    E = 2000           # random directed edges

    key = jax.random.PRNGKey(0)
    kx, ke, kp = jax.random.split(key, 3)

    x = jax.random.normal(kx, (N, IN_CHANNELS), jnp.float32)
    edge_index = jax.random.randint(ke, (2, E), 0, N, jnp.int32)

    params = init_encoder_params(kp, IN_CHANNELS, HIDDEN, NUM_LAYERS)

    # Tiled per-layer path (exercises the row x reduction grid / accumulator pipeline).
    out_tiled = encoder_forward(params, x, edge_index, fuse_layers=False)
    # Fully fused path (A + X resident in VMEM, all layers in one pallas_call).
    out_fused = encoder_forward(params, x, edge_index, fuse_layers=True)
    out_tiled, out_fused = jax.block_until_ready((out_tiled, out_fused))

    ref = ref_forward(params, x, edge_index)
    for name, out in (("tiled", out_tiled), ("fused", out_fused)):
        assert out.shape == (N, HIDDEN), (name, out.shape)
        max_err = float(jnp.max(jnp.abs(out - ref)))
        assert jnp.allclose(out, ref, atol=1e-2, rtol=1e-2), (name, max_err)

    print("KERNEL_OK")
</pallas_src>

<mosaic_0001>
module attributes {stable_mosaic.version = 11 : i64} {
  func.func @_sage_prelu_kernel(%arg0: i32, %arg1: i32, %arg2: memref<256x256xi8, #tpu.memory_space<vmem>>, %arg3: memref<256x1xf32, #tpu.memory_space<vmem>>, %arg4: memref<256x128xbf16, #tpu.memory_space<vmem>>, %arg5: memref<256x128xbf16, #tpu.memory_space<vmem>>, %arg6: memref<128x128xbf16, #tpu.memory_space<vmem>>, %arg7: memref<128x128xbf16, #tpu.memory_space<vmem>>, %arg8: memref<1x128xf32, #tpu.memory_space<vmem>>, %arg9: memref<1x128xf32, #tpu.memory_space<vmem>>, %arg10: memref<256x128xbf16, #tpu.memory_space<vmem>>, %arg11: memref<256x128xf32, #tpu.memory_space<vmem>>) attributes {dimension_semantics = [#tpu.dimension_semantics<parallel>, #tpu.dimension_semantics<arbitrary>], iteration_bounds = array<i64: 2, 2>, scalar_prefetch = 0 : i64, scratch_operands = 1 : i64, tpu.core_type = #tpu.core_type<tc>, window_params = [{transform_indices = @transform_0, window_bounds = array<i64: 256, 256>}, {transform_indices = @transform_1, window_bounds = array<i64: 256, 1>}, {transform_indices = @transform_2, window_bounds = array<i64: 256, 128>}, {transform_indices = @transform_3, window_bounds = array<i64: 256, 128>}, {pipeline_mode = #tpu.pipeline_mode<synchronous>, transform_indices = @transform_4, window_bounds = array<i64: 128, 128>}, {pipeline_mode = #tpu.pipeline_mode<synchronous>, transform_indices = @transform_5, window_bounds = array<i64: 128, 128>}, {pipeline_mode = #tpu.pipeline_mode<synchronous>, transform_indices = @transform_6, window_bounds = array<i64: 1, 128>}, {pipeline_mode = #tpu.pipeline_mode<synchronous>, transform_indices = @transform_7, window_bounds = array<i64: 1, 128>}, {transform_indices = @transform_8, window_bounds = array<i64: 256, 128>}]} {
    %c0_i32 = arith.constant 0 : i32
    %0 = arith.cmpi eq, %arg1, %c0_i32 : i32
    %1 = arith.extui %0 : i1 to i32
    %c0_i32_0 = arith.constant 0 : i32
    %2 = arith.cmpi ne, %1, %c0_i32_0 : i32
    scf.if %2 {
      %cst_9 = arith.constant 0.000000e+00 : f32
      %13 = vector.broadcast %cst_9 : f32 to vector<256x128xf32>
      %c0_10 = arith.constant 0 : index
      %c0_11 = arith.constant 0 : index
      %14 = vector.load %arg11[%c0_10, %c0_11] : memref<256x128xf32, #tpu.memory_space<vmem>>, vector<256x128xf32>
      tpu.vector_store %arg11[%c0_10, %c0_11], %13 {strides = array<i32>} : memref<256x128xf32, #tpu.memory_space<vmem>>, vector<256x128xf32>,
    } else {
    }
    %c0 = arith.constant 0 : index
    %c0_1 = arith.constant 0 : index
    %3 = vector.load %arg11[%c0, %c0_1] : memref<256x128xf32, #tpu.memory_space<vmem>>, vector<256x128xf32>
    %c0_2 = arith.constant 0 : index
    %c0_3 = arith.constant 0 : index
    %4 = vector.load %arg2[%c0_2, %c0_3] : memref<256x256xi8, #tpu.memory_space<vmem>>, vector<256x256xi8>
    %5 = arith.sitofp %4 : vector<256x256xi8> to vector<256x256xbf16>
    %c0_4 = arith.constant 0 : index
    %c0_5 = arith.constant 0 : index
    %6 = vector.load %arg4[%c0_4, %c0_5] : memref<256x128xbf16, #tpu.memory_space<vmem>>, vector<256x128xbf16>
    %cst = arith.constant dense<0.000000e+00> : vector<256x128xf32>
    %7 = tpu.matmul %5, %6, %cst {dimension_numbers = #tpu.dot_dimension_numbers<[1], [0], [0], [1], [0, 0, 1, 1], [], []>} : vector<256x256xbf16>, vector<256x128xbf16>, vector<256x128xf32> -> vector<256x128xf32>
    %8 = arith.addf %3, %7 : vector<256x128xf32>
    %c0_6 = arith.constant 0 : index
    %c0_7 = arith.constant 0 : index
    %9 = vector.load %arg11[%c0_6, %c0_7] : memref<256x128xf32, #tpu.memory_space<vmem>>, vector<256x128xf32>
    tpu.vector_store %arg11[%c0_6, %c0_7], %8 {strides = array<i32>} : memref<256x128xf32, #tpu.memory_space<vmem>>, vector<256x128xf32>,
    %c1_i32 = arith.constant 1 : i32
    %10 = arith.cmpi eq, %arg1, %c1_i32 : i32
    %11 = arith.extui %10 : i1 to i32
    %c0_i32_8 = arith.constant 0 : i32
    %12 = arith.cmpi ne, %11, %c0_i32_8 : i32
    scf.if %12 {
      %c0_9 = arith.constant 0 : index
      %c0_10 = arith.constant 0 : index
      %13 = vector.load %arg11[%c0_9, %c0_10] : memref<256x128xf32, #tpu.memory_space<vmem>>, vector<256x128xf32>
      %c0_11 = arith.constant 0 : index
      %c0_12 = arith.constant 0 : index
      %14 = vector.load %arg3[%c0_11, %c0_12] : memref<256x1xf32, #tpu.memory_space<vmem>>, vector<256x1xf32>
      %15 = vector.broadcast %14 : vector<256x1xf32> to vector<256x128xf32>
      %16 = arith.mulf %13, %15 : vector<256x128xf32>
      %17 = arith.truncf %16 : vector<256x128xf32> to vector<256x128xbf16>
      %c0_13 = arith.constant 0 : index
      %c0_14 = arith.constant 0 : index
      %18 = vector.load %arg6[%c0_13, %c0_14] : memref<128x128xbf16, #tpu.memory_space<vmem>>, vector<128x128xbf16>
      %cst_15 = arith.constant dense<0.000000e+00> : vector<256x128xf32>
      %19 = tpu.matmul %17, %18, %cst_15 {dimension_numbers = #tpu.dot_dimension_numbers<[1], [0], [0], [1], [0, 0, 1, 1], [], []>} : vector<256x128xbf16>, vector<128x128xbf16>, vector<256x128xf32> -> vector<256x128xf32>
      %c0_16 = arith.constant 0 : index
      %c0_17 = arith.constant 0 : index
      %20 = vector.load %arg5[%c0_16, %c0_17] : memref<256x128xbf16, #tpu.memory_space<vmem>>, vector<256x128xbf16>
      %c0_18 = arith.constant 0 : index
      %c0_19 = arith.constant 0 : index
      %21 = vector.load %arg7[%c0_18, %c0_19] : memref<128x128xbf16, #tpu.memory_space<vmem>>, vector<128x128xbf16>
      %cst_20 = arith.constant dense<0.000000e+00> : vector<256x128xf32>
      %22 = tpu.matmul %20, %21, %cst_20 {dimension_numbers = #tpu.dot_dimension_numbers<[1], [0], [0], [1], [0, 0, 1, 1], [], []>} : vector<256x128xbf16>, vector<128x128xbf16>, vector<256x128xf32> -> vector<256x128xf32>
      %23 = arith.addf %19, %22 : vector<256x128xf32>
      %c0_21 = arith.constant 0 : index
      %c0_22 = arith.constant 0 : index
      %24 = vector.load %arg8[%c0_21, %c0_22] : memref<1x128xf32, #tpu.memory_space<vmem>>, vector<1x128xf32>
      %25 = vector.broadcast %24 : vector<1x128xf32> to vector<256x128xf32>
      %26 = arith.addf %23, %25 : vector<256x128xf32>
      %cst_23 = arith.constant 0.000000e+00 : f32
      %27 = vector.broadcast %cst_23 : f32 to vector<256x128xf32>
      %28 = arith.cmpf ogt, %26, %27 : vector<256x128xf32>
      %c0_24 = arith.constant 0 : index
      %c0_25 = arith.constant 0 : index
      %29 = vector.load %arg9[%c0_24, %c0_25] : memref<1x128xf32, #tpu.memory_space<vmem>>, vector<1x128xf32>
      %30 = vector.broadcast %29 : vector<1x128xf32> to vector<256x128xf32>
      %31 = arith.mulf %30, %26 : vector<256x128xf32>
      %32 = arith.select %28, %26, %31 : vector<256x128xi1>, vector<256x128xf32>
      %33 = arith.truncf %32 : vector<256x128xf32> to vector<256x128xbf16>
      %c0_26 = arith.constant 0 : index
      %c0_27 = arith.constant 0 : index
      %34 = vector.load %arg10[%c0_26, %c0_27] : memref<256x128xbf16, #tpu.memory_space<vmem>>, vector<256x128xbf16>
      tpu.vector_store %arg10[%c0_26, %c0_27], %33 {strides = array<i32>} : memref<256x128xbf16, #tpu.memory_space<vmem>>, vector<256x128xbf16>,
    } else {
    }
    return
  }
  func.func @transform_0(%arg0: i32, %arg1: i32) -> (i32, i32) {
    %c0_i32 = arith.constant 0 : i32
    return %arg0, %arg1 : i32, i32
  }
  func.func @transform_1(%arg0: i32, %arg1: i32) -> (i32, i32) {
    %c0_i32 = arith.constant 0 : i32
    %c0_i32_0 = arith.constant 0 : i32
    return %arg0, %c0_i32 : i32, i32
  }
  func.func @transform_2(%arg0: i32, %arg1: i32) -> (i32, i32) {
    %c0_i32 = arith.constant 0 : i32
    %c0_i32_0 = arith.constant 0 : i32
    return %arg1, %c0_i32 : i32, i32
  }
  func.func @transform_3(%arg0: i32, %arg1: i32) -> (i32, i32) {
    %c0_i32 = arith.constant 0 : i32
    %c0_i32_0 = arith.constant 0 : i32
    return %arg0, %c0_i32 : i32, i32
  }
  func.func @transform_4(%arg0: i32, %arg1: i32) -> (i32, i32) {
    %c0_i32 = arith.constant 0 : i32
    %c0_i32_0 = arith.constant 0 : i32
    %c0_i32_1 = arith.constant 0 : i32
    return %c0_i32, %c0_i32_0 : i32, i32
  }
  func.func @transform_5(%arg0: i32, %arg1: i32) -> (i32, i32) {
    %c0_i32 = arith.constant 0 : i32
    %c0_i32_0 = arith.constant 0 : i32
    %c0_i32_1 = arith.constant 0 : i32
    return %c0_i32, %c0_i32_0 : i32, i32
  }
  func.func @transform_6(%arg0: i32, %arg1: i32) -> (i32, i32) {
    %c0_i32 = arith.constant 0 : i32
    %c0_i32_0 = arith.constant 0 : i32
    %c0_i32_1 = arith.constant 0 : i32
    return %c0_i32, %c0_i32_0 : i32, i32
  }
  func.func @transform_7(%arg0: i32, %arg1: i32) -> (i32, i32) {
    %c0_i32 = arith.constant 0 : i32
    %c0_i32_0 = arith.constant 0 : i32
    %c0_i32_1 = arith.constant 0 : i32
    return %c0_i32, %c0_i32_0 : i32, i32
  }
  func.func @transform_8(%arg0: i32, %arg1: i32) -> (i32, i32) {
    %c0_i32 = arith.constant 0 : i32
    %c0_i32_0 = arith.constant 0 : i32
    return %arg0, %c0_i32 : i32, i32
  }
}

</mosaic_0001>

<bundles_post_ra>
// kernel: tpu_custom_call.1
= control target key start
LH: loop header
LB: loop body
LE: loop exit
PB: predicated region body
PF: predicated region fallthrough
CT: control target
= control target key end

     0   :  { %s3891_s0 = inlined_call_operand.vmem [shape: s8[512,512], index: 0, kind: input, shape index: {}]   ;;  %s3892_s1 = inlined_call_operand.vmem [shape: f32[512,1], index: 1, kind: input, shape index: {}]   ;;  %s3893_s2 = inlined_call_operand.hbm [shape: bf16[512,128], index: 2, kind: input, shape index: {}]   ;;  %s3894_s3 = inlined_call_operand.hbm [shape: bf16[512,128], index: 3, kind: input, shape index: {}]   ;;  %s3895_s4 = inlined_call_operand.hbm [shape: bf16[128,128], index: 4, kind: input, shape index: {}]   ;;  %s3896_s5 = inlined_call_operand.hbm [shape: bf16[128,128], index: 5, kind: input, shape index: {}]   ;;  %s3897_s6 = inlined_call_operand.vmem [shape: f32[1,128], index: 6, kind: input, shape index: {}]   ;;  %s3898_s7 = inlined_call_operand.vmem [shape: f32[1,128], index: 7, kind: input, shape index: {}]   ;;  %s3899_s8 = inlined_call_operand.hbm [shape: bf16[512,128], index: 8, kind: output, shape index: {}]  }
   0x1   :  { %3917 = sst [smem:[#allocation30_spill]] %s3891_s0 }
   0x2   :  { %3918 = sst [smem:[#allocation31_spill]] %s3892_s1 }
   0x3   :  { %3919 = sst [smem:[#allocation32_spill]] %s3893_s2 }
   0x4   :  { %3920 = sst [smem:[#allocation33_spill]] %s3895_s4 }
   0x5   :  { %3921 = sst [smem:[#allocation34_spill]] %s3896_s5 }
   0x6   :  { %3922 = sst [smem:[#allocation35_spill]] %s3897_s6 }
   0x7   :  { %3923 = sst [smem:[#allocation36_spill]] %s3898_s7 }
   0x8   :  { %3924 = sst [smem:[#allocation37_spill]] %s3899_s8 }
   0x9   :  { %13 = vsyncpa [#allocation5], 0 }
   0xa   :  { %15 = vsyncpa [#allocation5 + $0x1], 0 }
   0xb   :  { %16 = vsyncpa [#allocation8], 0 }
   0xc   :  { %18 = vsyncpa [#allocation8 + $0x1], 0 }
   0xd   :  { %19 = vsyncpa [#allocation11], 0 }
   0xe   :  { %20 = vsyncpa [#allocation6], 0 }
   0xf   :  { %22 = vsyncpa [#allocation6 + $0x1], 0  ;;  %s3330_s27 = smov 0   ;;  %s3332_s28 = smov 0  }
  0x10   :  { %s3334_s29 = smov 0   ;;  %s3336_s30 = smov 0  }
  0x11   :  { %s3338_s9 = smov 0   ;;  %s3340_s10 = smov 0  }
  0x12   :  { %s3342_s11 = smov 0   ;;  %s3344_s12 = smov 0  }
  0x13   :  { %s3346_s13 = smov 0   ;;  %s3348_s14 = smov 0  }
  0x14   :  { %s3350_s15 = smov 0   ;;  %s3352_s16 = smov 0  }
  0x15   :  { %s3354_s17 = smov 0  }
  0x16 LB: > { %3925 = sst [smem:[#allocation18_spill]] %s3222_s27  ;;  %s3396_s18 = sadd.s32 4294967295, %s3270_s17   ;;  %s3270_s17 = sphi %s3354_s17, %s28_s17   ;;  %s3266_s16 = sphi %s3352_s16, %s3993_s16   ;;  %s3262_s15 = sphi %s3350_s15, %s3992_s15   ;;  %s3258_s14 = sphi %s3348_s14, %s3991_s14   ;;  %s3254_s13 = sphi %s3346_s13, %s3990_s13   ;;  %s3250_s12 = sphi %s3344_s12, %s3989_s12   ;;  %s3246_s11 = sphi %s3342_s11, %s3988_s11   ;;  %s3242_s10 = sphi %s3340_s10, %s3987_s10   ;;  %s3238_s9 = sphi %s3338_s9, %s3986_s9   ;;  %s3234_s30 = sphi %s3336_s30, %s3985_s30   ;;  %s3230_s29 = sphi %s3334_s29, %s3984_s29   ;;  %s3226_s28 = sphi %s3332_s28, %s3983_s28   ;;  %s3222_s27 = sphi %s3330_s27, %s3977_s27  }
  0x17   : > { %3926 = sst [smem:[#allocation19_spill]] %s3226_s28  ;;  %s37_s20 = sadd.s32 1, %s3262_s15 }
  0x18   : > { %3927 = sst [smem:[#allocation20_spill]] %s3254_s13  ;;  %s40_s21 = sadd.s32 1, %s3266_s16 }
  0x19   : > { %3928 = sst [smem:[#allocation21_spill]] %s3258_s14  ;;  %p38_p0 = scmp.ge.s32.totalorder %s37_s20, 2 }
  0x1a   : > { %s49_s22 = sadd.s32 1, %s3250_s12  ;;  %p56_p1 = scmp.ne.s32.totalorder %s3250_s12, %s3246_s11 }
  0x1b   : > { %p57_p2 = scmp.eq.s32.totalorder %s3270_s17, 0  ;;  %s3995_s20 = smov (%p38_p0, %s37_s20), 0 }
  0x1c   : > { %3929 = sst [smem:[#allocation22_spill]] %s3995_s20  ;;  %s3997_s21 = smov (!%p38_p0, %s40_s21), %s3266_s16 }
  0x1d   : > { %s45_s23 = ssub.s32 %s3262_s15, %s3995_s20  ;;  %p3412_p3 = por %p57_p2, %p56_p1 }
  0x1e   : > { %p42_p4 = scmp.ge.s32.totalorder %s3997_s21, 2  ;;  %p99_p5 = scmp.eq.s32.totalorder %s45_s23, 0 }
  0x1f   : > { %s101_s25 = sadd.s32 1, %s3242_s10  ;;  %p108_p6 = scmp.ne.s32.totalorder %s3242_s10, %s3238_s9 }
  0x20   : > { %s3999_s21 = smov (%p42_p4, %s3997_s21), 0  ;;  %p114_p8 = scmp.ne.s32.totalorder %s3238_s9, %s3234_s30 }
  0x21   : > { %3931 = sst [smem:[#allocation23_spill]] %s3999_s21  ;;  %s44_s19 = ssub.s32 %s3266_s16, %s3999_s21 }
  0x22   : > { %s3422_s26 = scalar_select %p99_p5, %s3242_s10, %s101_s25  }
  0x23   : > { %p3428_p7 = por %p108_p6, %p57_p2  ;;  %s46_s8 = sor.u32 %s45_s23, %s44_s19 }
  0x24   : > { %3932 = sst [smem:[#allocation24_spill]] %s3422_s26  ;;  %p47_p9 = scmp.eq.s32.totalorder %s46_s8, 0 }
  0x25   : > { %p3904_p10 = scmp.eq.s32.totalorder %s3396_s18, 0  ;;  %p125_p11 = scmp.eq.s32.totalorder %s44_s19, 0 }
  0x26   : > { %s127_s7 = sadd.s32 1, %s3230_s29  ;;  %p134_p13 = scmp.ne.s32.totalorder %s3230_s29, %s3226_s28 }
  0x27   : > { %s3437_s6 = scalar_select %p47_p9, %s3250_s12, %s49_s22  }
  0x28   : > { %p3441_p12 = por %p3904_p10, %p114_p8  ;;  %p3452_p0 = por %p134_p13, %p57_p2 }
  0x29   : > { %3934 = sst [smem:[#allocation25_spill]] %s3437_s6  ;;  %p140_p1 = scmp.ne.s32.totalorder %s3226_s28, %s3222_s27 }
  0x2a   : > { %s3935_s25 = scalar_select %p3441_p12, 1, 0 }
  0x2b   : > { %s3448_s21 = scalar_select %p125_p11, %s3230_s29, %s127_s7  }
  0x2c   : > { %s3937_s26 = scalar_select %p3452_p0, 1, 0 }
  0x2d   : > { %3936 = sst [smem:[#allocation26_spill]] %s3448_s21  ;;  %p248_p4 = scmp.eq.s32.totalorder %s3396_s18, 3 }
  0x2e   : > { %s3938_s8 = sadd.s32 4294967294, %s3270_s17   ;;  %p3463_p6 = por %p140_p1, %p3904_p10 }
  0x2f   : > { %p254_p5 = scmp.eq.s32.totalorder %s3938_s8, 3  ;;  %p2308_p8 = scmp.ge.s32.totalorder %s3270_s17, 1 }
  0x30   : > { %s3939_s30 = scalar_select %p3463_p6, 1, 0 }
  0x31   : > { %p3468_p9 = por %p248_p4, %p134_p13  ;;  %p3472_p11 = por %p254_p5, %p140_p1 }
  0x32   : > { %3940 = sst [smem:[#allocation27_spill]] %s3939_s30  ;;  %p261_p2 = scmp.lt.s32.totalorder %s3270_s17, 5 }
  0x33   : > { %s3941_s19 = scalar_select %p3468_p9, 1, 0 }
  0x34   : > { %s3943_s7 = scalar_select %p3472_p11, 1, 0 }
  0x35   : > { %3942 = sst [smem:[#allocation28_spill]] %s3941_s19  ;;  %p3477_p12 = pnand %p2308_p8, %p261_p2 }
  0x36   : > { %3944 = sst [smem:[#allocation29_spill]] %s3943_s7  ;;  %s3272_s23 = smov [#allocation9]  }
  0x37   : > { %s3945_s22 = scalar_select %p3477_p12, 1, 0 }
  0x38   : > { %s273_s8 = sshll.u32 %s3272_s23, 4  ;;  %p2838_p10 = pneg %p3477_p12  ;;  %s274_s8 = int_to_ptr.vmem [resolvable:$true] %s273_s8 }
  0x39   : > { %s3273_s6 = smov [#allocation10]   ;;  %p3946_p13 = scmp.eq.s32.totalorder %s3396_s18, 0 }
  0x3a   : > { %s286_s21 = sshll.u32 %s3273_s6, 4  ;;  %s3029_s7 = scalar_lea.vmem %s274_s8, 1024  ;;  %s287_s21 = int_to_ptr.vmem [resolvable:$true] %s286_s21 }
  0x3b   : > { %p3485_p4 = pnand %p2838_p10, %p3946_p13  ;;  %p3030_p5 = scmp.ne.s32.totalorder %s274_s8, %s3029_s7 }
  0x3c   : > { %p3037_p11 = scmp.lt.s32.totalorder %s274_s8, %s274_s8  ;;  %p3038_p9 = scmp.lt.s32.totalorder %s3029_s7, %s3029_s7 }
  0x3d   : > { %p3020_p1 = pneg %p3485_p4 }
  0x3e   : > { %p3039_p6 = por %p3038_p9, %p3037_p11 }
  0x3f   : > { %p3032_p8 = pnand %p3030_p5, %p3020_p1 }
  0x41   : > { %p3033_p2 = pneg %p3032_p8 }
  0x43   : > { %p3040_p12 = pnand %p3039_p6, %p3033_p2 }
  0x45   : > { %3043 = shalt.err (!%p3040_p12)
}
  0x46   : > { %s3274_s6 = smov 64   ;;  %s3275_s23 = smov 4  }
  0x47   : > { %s3948_s4 = sld [smem:[#allocation33_spill]]  ;;  %s3055_s1 = scalar_lea.vmem %s287_s21, 1024 }
  0x48   : > { %p3056_p10 = scmp.ne.s32.totalorder %s287_s21, %s3055_s1  ;;  %p3063_p8 = scmp.lt.s32.totalorder %s287_s21, %s287_s21 }
  0x49   : > { %p3064_p0 = scmp.lt.s32.totalorder %s3055_s1, %s3055_s1 }
  0x4a   : > { %p3058_p13 = pnand %p3056_p10, %p3020_p1 }
  0x4b   : > { %p3065_p9 = por %p3064_p0, %p3063_p8 }
  0x4c   : > { %p3059_p5 = pneg %p3058_p13 }
  0x4d   : > { %2841 = dma.hbm_to_vmem [thread:$0]  (!%p3485_p4), %s3948_s4, 1024, %s274_s8, [#allocation8], %s3274_s6, %s3274_s6, %s3275_s23  }
  0x4e   : > { %p3066_p6 = pnand %p3065_p9, %p3059_p5 }
  0x50   : > { %3069 = shalt.err (!%p3066_p6)
}
  0x51   : > { %s3949_s5 = sld [smem:[#allocation34_spill]]  ;;  %p2311_p12 = scmp.ge.s32.totalorder %s3270_s17, 4 }
  0x53   : > { %302 = sbr.rel (%p2311_p12) target bundleno = 138 (0x8a), region = 32 }
  0x57   : > { %2844 = dma.hbm_to_vmem [thread:$0]  (!%p3485_p4), %s3949_s5, 1024, %s287_s21, [#allocation11], %s3274_s6, %s3274_s6, %s3275_s23  }
  0x58   : > { %305 = sbr.rel (!%p3412_p3) target bundleno = 106 (0x6a), region = 36  ;;  %s307_s13 = sand.u32 (%p3412_p3), 1, %s3250_s12  }
  0x59   : > { %s2314_s1 = sshll.u32 (%p3412_p3), %s3262_s15, 1  ;;  %s2312_s19 = sshll.u32 (%p3412_p3), %s307_s13, 7 }
  0x5a   : > { %s2421_s8 = sshll.u32 (%p3412_p3), %s3266_s16, 5  ;;  %s3950_s0 = sld [smem:[#allocation30_spill]] (%p3412_p3) }
  0x5b   : > { %s313_s4 = sadd.s32 (%p3412_p3), %s2421_s8, %s2314_s1  ;;  %s309_s21 = scalar_lea.vmem (%p3412_p3), [#allocation3], %s2312_s19 }
  0x5c   : > { %s2316_s30 = sshll.u32 (%p3412_p3), %s313_s4, 3 }
  0x60   : > { %s3516_s14 = scalar_lea.vmem %s3950_s0, %s2316_s30 }
  0x61   : > { %v328_v0 = vld [vmem:[%s3516_s14] sm:$0xff]  ;;  %v330_v1 = vld [vmem:[%s3516_s14 + $0x8] sm:$0xff] }
  0x62   : > { %v332_v2 = vld [vmem:[%s3516_s14 + $0x20] sm:$0xff]  ;;  %329 = vst [vmem:[%s309_s21] sm:$0xff] %v328_v0  ;;  %331 = vst [vmem:[%s309_s21 + $0x8] sm:$0xff] %v330_v1  ;;  %v334_v3 = vld [vmem:[%s3516_s14 + $0x28] sm:$0xff] }
  0x63   : > { %333 = vst [vmem:[%s309_s21 + $0x10] sm:$0xff] %v332_v2  ;;  %v336_v4 = vld [vmem:[%s3516_s14 + $0x40] sm:$0xff]  ;;  %v338_v5 = vld [vmem:[%s3516_s14 + $0x48] sm:$0xff]  ;;  %335 = vst [vmem:[%s309_s21 + $0x18] sm:$0xff] %v334_v3 }
  0x64   : > { %337 = vst [vmem:[%s309_s21 + $0x20] sm:$0xff] %v336_v4  ;;  %339 = vst [vmem:[%s309_s21 + $0x28] sm:$0xff] %v338_v5  ;;  %v340_v6 = vld [vmem:[%s3516_s14 + $0x60] sm:$0xff]  ;;  %v342_v7 = vld [vmem:[%s3516_s14 + $0x68] sm:$0xff] }
  0x65   : > { %v344_v8 = vld [vmem:[%s3516_s14 + $0x80] sm:$0xff]  ;;  %341 = vst [vmem:[%s309_s21 + $0x30] sm:$0xff] %v340_v6  ;;  %343 = vst [vmem:[%s309_s21 + $0x38] sm:$0xff] %v342_v7  ;;  %v346_v9 = vld [vmem:[%s3516_s14 + $0x88] sm:$0xff] }
  0x66   : > { %345 = vst [vmem:[%s309_s21 + $0x40] sm:$0xff] %v344_v8  ;;  %v348_v10 = vld [vmem:[%s3516_s14 + $0xa0] sm:$0xff]  ;;  %v350_v11 = vld [vmem:[%s3516_s14 + $0xa8] sm:$0xff]  ;;  %347 = vst [vmem:[%s309_s21 + $0x48] sm:$0xff] %v346_v9 }
  0x67   : > { %349 = vst [vmem:[%s309_s21 + $0x50] sm:$0xff] %v348_v10  ;;  %351 = vst [vmem:[%s309_s21 + $0x58] sm:$0xff] %v350_v11  ;;  %v352_v12 = vld [vmem:[%s3516_s14 + $0xc0] sm:$0xff]  ;;  %v354_v13 = vld [vmem:[%s3516_s14 + $0xc8] sm:$0xff] }
  0x68   : > { %v356_v14 = vld [vmem:[%s3516_s14 + $0xe0] sm:$0xff]  ;;  %353 = vst [vmem:[%s309_s21 + $0x60] sm:$0xff] %v352_v12  ;;  %355 = vst [vmem:[%s309_s21 + $0x68] sm:$0xff] %v354_v13  ;;  %v358_v15 = vld [vmem:[%s3516_s14 + $0xe8] sm:$0xff] }
  0x69   : > { %357 = vst [vmem:[%s309_s21 + $0x70] sm:$0xff] %v356_v14  ;;  %359 = vst [vmem:[%s309_s21 + $0x78] sm:$0xff] %v358_v15 }
  0x6a PF: > { %s375_s4 = sand.u32 1, %s3242_s10   ;;  %s2422_s28 = sshll.u32 %s3262_s15, 11 }
  0x6b   : > { %s2317_s24 = sshll.u32 %s375_s4, 7  ;;  %s3951_s2 = sld [smem:[#allocation32_spill]] }
  0x6c   : > { %s379_s7 = scalar_lea.vmem [#allocation4], %s2317_s24  ;;  %s376_s1 = scalar_lea.sflag [#allocation5], %s375_s4 }
  0x6d   : > { %s386_s13 = sshll.u32 %s379_s7, 4  ;;  %s3276_s8 = smov [#allocation4]   ;;  %s387_s13 = int_to_ptr.vmem [resolvable:$true] %s386_s13 }
  0x6e   : > { %s3082_s19 = scalar_lea.vmem %s387_s13, 2048  ;;  %s3086_s27 = sshll.u32 %s3276_s8, 4  ;;  %s3087_s27 = int_to_ptr.vmem [resolvable:$false] %s3086_s27 }
  0x6f   : > { %p3083_p3 = scmp.ne.s32.totalorder %s387_s13, %s3082_s19  ;;  %s3088_s14 = scalar_lea.vmem %s3087_s27, 4096 }
  0x70   : > { %p3089_p4 = scmp.lt.s32.totalorder %s387_s13, %s3087_s27  ;;  %p3090_p1 = scmp.lt.s32.totalorder %s3088_s14, %s3082_s19 }
  0x71   : > { %s385_s23 = scalar_lea.hbm %s3951_s2, %s2422_s28  ;;  %p3084_p0 = pnand %p3083_p3, %p3428_p7 }
  0x72   : > { %p3091_p2 = por %p3090_p1, %p3089_p4 }
  0x73   : > { %p3085_p11 = pneg %p3084_p0 }
  0x75   : > { %p3092_p10 = pnand %p3091_p2, %p3085_p11 }
  0x77   : > { %3095 = shalt.err (!%p3092_p10)
}
  0x78   : > { %s3277_s21 = smov 64   ;;  %s3278_s4 = smov 4  }
  0x79   : > { %2828 = dma.hbm_to_vmem [thread:$0]  (%p3428_p7), %s385_s23, 2048, %s387_s13, %s376_s1, %s3277_s21, %s3277_s21, %s3278_s4  }
  0x7a   : > { %s396_s28 = sand.u32 1, %s3270_s17   ;;  %s398_s24 = sand.u32 1, %s3230_s29  }
  0x7b   : > { %s2320_s30 = sshll.u32 %s398_s24, 7  ;;  %s2423_s6 = sshll.u32 %s3266_s16, 11 }
  0x7c   : > { %s406_s19 = scalar_lea.hbm %s3894_s3, %s2423_s6  ;;  %s400_s27 = scalar_lea.vmem [#allocation7], %s2320_s30 }
  0x7d   : > { %s407_s14 = sshll.u32 %s400_s27, 4  ;;  %s397_s0 = scalar_lea.sflag [#allocation8], %s396_s28  ;;  %s408_s14 = int_to_ptr.vmem [resolvable:$true] %s407_s14 }
  0x7e   : > { %s3108_s2 = scalar_lea.vmem %s408_s14, 2048  ;;  %p3952_p5 = scmp.ne.s32.totalorder %s3937_s26, 0 }
  0x7f   : > { %p3109_p13 = scmp.ne.s32.totalorder %s408_s14, %s3108_s2  ;;  %s3279_s5 = smov [#allocation7]  }
  0x80   : > { %s3112_s20 = sshll.u32 %s3279_s5, 4  ;;  %s3113_s20 = int_to_ptr.vmem [resolvable:$false] %s3112_s20 }
  0x81   : > { %p3110_p8 = pnand %p3109_p13, %p3952_p5  ;;  %s3114_s23 = scalar_lea.vmem %s3113_s20, 4096 }
  0x82   : > { %p3115_p7 = scmp.lt.s32.totalorder %s408_s14, %s3113_s20  ;;  %p3116_p6 = scmp.lt.s32.totalorder %s3114_s23, %s3108_s2 }
  0x83   : > { %p3111_p9 = pneg %p3110_p8 }
  0x84   : > { %p3117_p12 = por %p3116_p6, %p3115_p7 }
  0x86   : > { %p3118_p3 = pnand %p3117_p12, %p3111_p9 }
  0x88   : > { %3121 = shalt.err (!%p3118_p3)
}
  0x89   : > { %2829 = dma.hbm_to_vmem [thread:$0]  (%p3952_p5), %s406_s19, 2048, %s408_s14, %s397_s0, %s3277_s21, %s3277_s21, %s3278_s4  }
  0x8a PF: > { %p3953_p0 = scmp.ne.s32.totalorder %s3945_s22, 0 }
  0x8b   : > { %s422_s13 = sand.u32 (!%p3953_p0), 1, %s3246_s11   ;;  %s428_s1 = sand.u32 (!%p3953_p0), 1, %s3238_s9  }
  0x8c   : > { %419 = sbr.rel (%p3953_p0) target bundleno = 915 (0x393), region = 71  ;;  %s2324_s5 = sshll.u32 (!%p3953_p0), %s422_s13, 7 }
  0x8d   : > { %s2325_s28 = sshll.u32 (!%p3953_p0), %s428_s1, 7  ;;  %s3557_s24 = scalar_lea.vmem (!%p3953_p0), [#allocation3], %s2324_s5 }
  0x8e   : > { %s429_s2 = scalar_lea.sflag (!%p3953_p0), [#allocation5], %s428_s1  ;;  %s3559_s30 = scalar_lea.vmem (!%p3953_p0), [#allocation4], %s2325_s28 }
  0x8f   : > { %p3954_p11 = scmp.ne.s32.totalorder (!%p3953_p0), %s3935_s25, 0 }
  0x91   : > { %3201 = dma.done.wait (%p3954_p11), %s429_s2, 2048  }
  0x92   : > { %3203 = vsyncadd (%p3954_p11), %s429_s2, 4294965248  ;;  %s3955_s0 = sld [smem:[#allocation19_spill]]  ;;  %s437_s22 = sand.u32 1, %s3396_s18  }
  0x93   : > { %s3956_s26 = sld [smem:[#allocation27_spill]]  ;;  %s438_s4 = scalar_lea.sflag [#allocation8], %s437_s22 }
  0x98   : > { %s439_s21 = sand.u32 1, %s3955_s0  }
  0x99   : > { %s2326_s11 = sshll.u32 %s439_s21, 7  ;;  %p3957_p4 = scmp.ne.s32.totalorder %s3956_s26, 0 }
  0x9a   : > { %s3569_s6 = scalar_lea.vmem [#allocation7], %s2326_s11 }
  0x9b   : > { %3205 = dma.done.wait (%p3957_p4), %s438_s4, 2048  }
  0x9c   : > { %3207 = vsyncadd (%p3957_p4), %s438_s4, 4294965248  ;;  %p3958_p1 = scmp.eq.s32.totalorder %s3396_s18, 0 }
  0x9e   : > { %3209 = dma.done.wait (%p3958_p1), [#allocation8], 1024   ;;  %p3959_p2 = pmov %p3958_p1 }
  0x9f   : > { %p3960_p10 = pmov %p3958_p1 }
  0xa0   : > { %3211 = vsyncadd (%p3959_p2), [#allocation8], 4294966272 }
  0xa1   : > { %3213 = dma.done.wait (%p3960_p10), [#allocation11], 1024   ;;  %p3961_p13 = pmov %p3958_p1 }
  0xa2   : > { %s3962_s25 = sld [smem:[#allocation21_spill]]  ;;  %s3589_s23 = scalar_lea.vmem [#allocation12], %s2326_s11 }
  0xa3   : > { %3215 = vsyncadd (%p3961_p13), [#allocation11], 4294966272  ;;  %s3963_s14 = sld [smem:[#allocation31_spill]] }
  0xa4   : > { %s3964_s13 = sld [smem:[#allocation20_spill]] }
  0xa8   : > { %s2330_s7 = sshll.u32 %s3962_s25, 5 }
  0xa9   : > { %p499_p5 = scmp.lt.s32.totalorder %s2330_s7, 63 }
  0xaa   : > { %p2332_p8 = scmp.ne.s32.totalorder %s3964_s13, 0 }
  0xab   : > { %s4001_s7 = smov (!%p499_p5, %s2330_s7), 63 }
  0xac   : > { %s2331_s8 = sshll.u32 %s4001_s7, 3  ;;  %511 = sbr.rel (%p2332_p8) target bundleno = 194 (0xc2), region = 95 }
  0xad   : > { %s3587_s20 = scalar_lea.vmem %s3963_s14, %s2331_s8 }
  0xb1   : > { %v3280_v16 = vmov 0.0  }
  0xb2   : > { %512 = vst [vmem:[#allocation2 + $0xb0] sm:$0xff] %v3280_v16  ;;  %513 = vst [vmem:[#allocation2] sm:$0xff] %v3280_v16 }
  0xb3   : > { %514 = vst [vmem:[#allocation2 + $0xd8] sm:$0xff] %v3280_v16  ;;  %515 = vst [vmem:[#allocation2 + $0x18] sm:$0xff] %v3280_v16 }
  0xb4   : > { %516 = vst [vmem:[#allocation2 + $0x50] sm:$0xff] %v3280_v16  ;;  %517 = vst [vmem:[#allocation2 + $0x68] sm:$0xff] %v3280_v16 }
  0xb5   : > { %518 = vst [vmem:[#allocation2 + $0x30] sm:$0xff] %v3280_v16  ;;  %519 = vst [vmem:[#allocation2 + $0x48] sm:$0xff] %v3280_v16 }
  0xb6   : > { %520 = vst [vmem:[#allocation2 + $0x80] sm:$0xff] %v3280_v16  ;;  %521 = vst [vmem:[#allocation2 + $0x88] sm:$0xff] %v3280_v16 }
  0xb7   : > { %522 = vst [vmem:[#allocation2 + $0xe8] sm:$0xff] %v3280_v16  ;;  %523 = vst [vmem:[#allocation2 + $0xb8] sm:$0xff] %v3280_v16 }
  0xb8   : > { %524 = vst [vmem:[#allocation2 + $0x60] sm:$0xff] %v3280_v16  ;;  %525 = vst [vmem:[#allocation2 + $0xf0] sm:$0xff] %v3280_v16 }
  0xb9   : > { %526 = vst [vmem:[#allocation2 + $0x8] sm:$0xff] %v3280_v16  ;;  %527 = vst [vmem:[#allocation2 + $0x78] sm:$0xff] %v3280_v16 }
  0xba   : > { %528 = vst [vmem:[#allocation2 + $0x38] sm:$0xff] %v3280_v16  ;;  %529 = vst [vmem:[#allocation2 + $0x58] sm:$0xff] %v3280_v16 }
  0xbb   : > { %530 = vst [vmem:[#allocation2 + $0x40] sm:$0xff] %v3280_v16  ;;  %531 = vst [vmem:[#allocation2 + $0xc8] sm:$0xff] %v3280_v16 }
  0xbc   : > { %532 = vst [vmem:[#allocation2 + $0xe0] sm:$0xff] %v3280_v16  ;;  %533 = vst [vmem:[#allocation2 + $0x90] sm:$0xff] %v3280_v16 }
  0xbd   : > { %534 = vst [vmem:[#allocation2 + $0x70] sm:$0xff] %v3280_v16  ;;  %535 = vst [vmem:[#allocation2 + $0xc0] sm:$0xff] %v3280_v16 }
  0xbe   : > { %536 = vst [vmem:[#allocation2 + $0xa8] sm:$0xff] %v3280_v16  ;;  %537 = vst [vmem:[#allocation2 + $0xd0] sm:$0xff] %v3280_v16 }
  0xbf   : > { %538 = vst [vmem:[#allocation2 + $0x10] sm:$0xff] %v3280_v16  ;;  %539 = vst [vmem:[#allocation2 + $0x28] sm:$0xff] %v3280_v16 }
  0xc0   : > { %540 = vst [vmem:[#allocation2 + $0xa0] sm:$0xff] %v3280_v16  ;;  %541 = vst [vmem:[#allocation2 + $0xf8] sm:$0xff] %v3280_v16 }
  0xc1   : > { %542 = vst [vmem:[#allocation2 + $0x20] sm:$0xff] %v3280_v16  ;;  %543 = vst [vmem:[#allocation2 + $0x98] sm:$0xff] %v3280_v16 }
  0xc2 PF: > { %v2968_v17 = vld [vmem:[%s3559_s30 + $0x78] sm:$0xff]   ;;  %v2970_v19 = vld [vmem:[%s3559_s30 + $0x70] sm:$0xff]   ;;  %v2972_v21 = vld [vmem:[%s3559_s30 + $0x68] sm:$0xff]   ;;  %s3965_s18 = sld [smem:[#allocation20_spill]] }
  0xc3   : > { %v2969_v18 = vld [vmem:[%s3559_s30 + $0x38] sm:$0xff]   ;;  %2552 = vmatprep.subr.bf16.mxu0 %v2968_v17  ;;  %2808 = vmatprep.subr.bf16.mxu1 %v2968_v17  ;;  %v2971_v20 = vld [vmem:[%s3559_s30 + $0x30] sm:$0xff]   ;;  %v2973_v22 = vld [vmem:[%s3559_s30 + $0x28] sm:$0xff]  }
  0xc4   : > { %2553 = vmatpush3.bf16.msra.mxu0 %v2969_v18  ;;  %2816 = vmatpush3.bf16.msra.mxu1 %v2969_v18  ;;  %v2974_v23 = vld [vmem:[%s3559_s30 + $0x60] sm:$0xff]   ;;  %v2976_v25 = vld [vmem:[%s3559_s30 + $0x58] sm:$0xff]   ;;  %v2978_v27 = vld [vmem:[%s3559_s30 + $0x50] sm:$0xff]  }
  0xc5   : > { %2554 = vmatprep.subr.bf16.mxu0 %v2970_v19  ;;  %2809 = vmatprep.subr.bf16.mxu1 %v2970_v19  ;;  %v2975_v24 = vld [vmem:[%s3559_s30 + $0x20] sm:$0xff]   ;;  %v2977_v26 = vld [vmem:[%s3559_s30 + $0x18] sm:$0xff]   ;;  %v577_v28 = vld [vmem:[%s3557_s24 + $0x8] sm:$0xff] }
  0xc6   : > { %v585_v29 = vld [vmem:[%s3557_s24 + $0x48] sm:$0xff]  ;;  %v593_v30 = vunpack.c.l.s8.bf16 %v577_v28  ;;  %v2979_v32 = vld [vmem:[%s3559_s30 + $0x10] sm:$0xff]   ;;  %v2982_v35 = vld [vmem:[%s3559_s30 + $0x40] sm:$0xff]   ;;  %v595_v41 = vunpack.c.h.s8.bf16 %v577_v28 }
  0xc7   : > { %v609_v31 = vunpack.c.l.s8.bf16 %v585_v29  ;;  %v2980_v33 = vld [vmem:[%s3559_s30 + $0x48] sm:$0xff]   ;;  %v2983_v36 = vld [vmem:[%s3559_s30] sm:$0xff]   ;;  %v611_v42 = vunpack.c.h.s8.bf16 %v585_v29  ;;  %v579_v43 = vld [vmem:[%s3557_s24 + $0x18] sm:$0xff] }
  0xc8   : > { %2555 = vmatpush3.bf16.msra.mxu0 %v2971_v20  ;;  %2817 = vmatpush3.bf16.msra.mxu1 %v2971_v20  ;;  %v2981_v34 = vld [vmem:[%s3559_s30 + $0x8] sm:$0xff]   ;;  %v576_v37 = vld [vmem:[%s3557_s24] sm:$0xff]  ;;  %v587_v44 = vld [vmem:[%s3557_s24 + $0x58] sm:$0xff]  ;;  %v597_v47 = vunpack.c.l.s8.bf16 %v579_v43  ;;  %v599_v53 = vunpack.c.h.s8.bf16 %v579_v43  ;;  %p2349_p9 = scmp.ne.s32.totalorder %s3965_s18, 1 }
  0xc9   : > { %2556 = vmatprep.subr.bf16.mxu0 %v2972_v21  ;;  %2810 = vmatprep.subr.bf16.mxu1 %v2972_v21  ;;  %v584_v38 = vld [vmem:[%s3557_s24 + $0x40] sm:$0xff]  ;;  %v592_v39 = vunpack.c.l.s8.bf16 %v576_v37  ;;  %v594_v45 = vunpack.c.h.s8.bf16 %v576_v37  ;;  %v613_v48 = vunpack.c.l.s8.bf16 %v587_v44  ;;  %v578_v49 = vld [vmem:[%s3557_s24 + $0x10] sm:$0xff]  ;;  %v615_v54 = vunpack.c.h.s8.bf16 %v587_v44  ;;  %v581_v55 = vld [vmem:[%s3557_s24 + $0x28] sm:$0xff]  ;;  %s3966_s28 = sld [smem:[#allocation35_spill]] (!%p2349_p9) }
  0xca   : > { %784 = vmatprep.mubr.bf16.mxu0 %v593_v30  ;;  %848 = vmatprep.mubr.bf16.mxu1 %v609_v31  ;;  %v608_v40 = vunpack.c.l.s8.bf16 %v584_v38  ;;  %v610_v46 = vunpack.c.h.s8.bf16 %v584_v38  ;;  %v586_v50 = vld [vmem:[%s3557_s24 + $0x50] sm:$0xff]  ;;  %v596_v51 = vunpack.c.l.s8.bf16 %v578_v49  ;;  %v589_v56 = vld [vmem:[%s3557_s24 + $0x68] sm:$0xff]  ;;  %v598_v57 = vunpack.c.h.s8.bf16 %v578_v49  ;;  %v580_v61 = vld [vmem:[%s3557_s24 + $0x20] sm:$0xff]  ;;  %s3967_s30 = sld [smem:[#allocation36_spill]] (!%p2349_p9) }
  0xcb   : > { %v612_v52 = vunpack.c.l.s8.bf16 %v586_v50  ;;  %v614_v58 = vunpack.c.h.s8.bf16 %v586_v50  ;;  %v601_v59 = vunpack.c.l.s8.bf16 %v581_v55  ;;  %v617_v60 = vunpack.c.l.s8.bf16 %v589_v56  ;;  %v588_v62 = vld [vmem:[%s3557_s24 + $0x60] sm:$0xff]  ;;  %v583_v3 = vld [vmem:[%s3557_s24 + $0x38] sm:$0xff]  ;;  %v582_v9 = vld [vmem:[%s3557_s24 + $0x30] sm:$0xff] }
  0xcc   : > { %2557 = vmatpush3.bf16.msra.mxu0 %v2973_v22  ;;  %2818 = vmatpush3.bf16.msra.mxu1 %v2973_v22  ;;  %v600_v63 = vunpack.c.l.s8.bf16 %v580_v61  ;;  %v616_v0 = vunpack.c.l.s8.bf16 %v588_v62  ;;  %v603_v1 = vunpack.c.h.s8.bf16 %v581_v55  ;;  %v619_v2 = vunpack.c.h.s8.bf16 %v589_v56  ;;  %v591_v4 = vld [vmem:[%s3557_s24 + $0x78] sm:$0xff]  ;;  %v590_v10 = vld [vmem:[%s3557_s24 + $0x70] sm:$0xff]  ;;  %v545_v29 = vld [vmem:[#allocation2] sm:$0xff] }
  0xcd   : > { %2558 = vmatprep.subr.bf16.mxu0 %v2974_v23  ;;  %2811 = vmatprep.subr.bf16.mxu1 %v2974_v23  ;;  %v602_v5 = vunpack.c.h.s8.bf16 %v580_v61  ;;  %v618_v6 = vunpack.c.h.s8.bf16 %v588_v62  ;;  %v605_v7 = vunpack.c.l.s8.bf16 %v583_v3  ;;  %v621_v8 = vunpack.c.l.s8.bf16 %v591_v4  ;;  %v544_v19 = vld [vmem:[#allocation2 + $0xb0] sm:$0xff]  ;;  %v560_v21 = vld [vmem:[#allocation2 + $0x38] sm:$0xff]  ;;  %v564_v61 = vld [vmem:[#allocation2 + $0xe0] sm:$0xff] }
  0xce   : > { %v604_v11 = vunpack.c.l.s8.bf16 %v582_v9  ;;  %v620_v12 = vunpack.c.l.s8.bf16 %v590_v10  ;;  %v607_v13 = vunpack.c.h.s8.bf16 %v583_v3  ;;  %v623_v14 = vunpack.c.h.s8.bf16 %v591_v4  ;;  %v561_v31 = vld [vmem:[#allocation2 + $0x58] sm:$0xff] }
  0xcf   : > { %v606_v15 = vunpack.c.h.s8.bf16 %v582_v9  ;;  %v622_v16 = vunpack.c.h.s8.bf16 %v590_v10  ;;  %v547_v49 = vld [vmem:[#allocation2 + $0x18] sm:$0xff] }
  0xd0   : > { %2559 = vmatpush3.bf16.msra.mxu0 %v2975_v24  ;;  %2819 = vmatpush3.bf16.msra.mxu1 %v2975_v24 }
  0xd1   : > { %2560 = vmatprep.subr.bf16.mxu0 %v2976_v25  ;;  %2812 = vmatprep.subr.bf16.mxu1 %v2976_v25 }
  0xd4   : > { %2561 = vmatpush3.bf16.msra.mxu0 %v2977_v26  ;;  %2820 = vmatpush3.bf16.msra.mxu1 %v2977_v26 }
  0xd5   : > { %2562 = vmatprep.subr.bf16.mxu0 %v2978_v27  ;;  %2813 = vmatprep.subr.bf16.mxu1 %v2978_v27 }
  0xd8   : > { %2563 = vmatpush3.bf16.msra.mxu0 %v2979_v32  ;;  %2821 = vmatpush3.bf16.msra.mxu1 %v2979_v32 }
  0xd9   : > { %2564 = vmatprep.subr.bf16.mxu0 %v2980_v33  ;;  %2814 = vmatprep.subr.bf16.mxu1 %v2980_v33 }
  0xdc   : > { %2565 = vmatpush3.bf16.msra.mxu0 %v2981_v34  ;;  %2822 = vmatpush3.bf16.msra.mxu1 %v2981_v34 }
  0xdd   : > { %2566 = vmatprep.subr.bf16.mxu0 %v2982_v35  ;;  %2815 = vmatprep.subr.bf16.mxu1 %v2982_v35 }
  0xe0   : > { %2567 = vmatpush3.bf16.msra.mxu0 %v2983_v36  ;;  %2823 = vmatpush3.bf16.msra.mxu1 %v2983_v36 }
  0xe3   : > { %785 = vmatmul.mubr.bf16.vlgmr.msra.gmra.mxu0 %v592_v39  ;;  %849 = vmatmul.mubr.bf16.vlgmr.msra.gmra.mxu1 %v608_v40  ;;  %v546_v39 = vld [vmem:[#allocation2 + $0xd8] sm:$0xff] }
  0xe4   : > { %792 = vmatprep.mubr.bf16.mxu0 %v595_v41  ;;  %856 = vmatprep.mubr.bf16.mxu1 %v611_v42  ;;  %v562_v41 = vld [vmem:[#allocation2 + $0x40] sm:$0xff] }
  0xeb   : > { %793 = vmatmul.mubr.bf16.gmra.mxu0 %v594_v45  ;;  %857 = vmatmul.mubr.bf16.gmra.mxu1 %v610_v46 }
  0xec   : > { %800 = vmatprep.mubr.bf16.mxu0 %v597_v47  ;;  %864 = vmatprep.mubr.bf16.mxu1 %v613_v48 }
  0xf3   : > { %801 = vmatmul.mubr.bf16.gmra.mxu0 %v596_v51  ;;  %865 = vmatmul.mubr.bf16.gmra.mxu1 %v612_v52  ;;  %v563_v51 = vld [vmem:[#allocation2 + $0xc8] sm:$0xff] }
  0xf4   : > { %808 = vmatprep.mubr.bf16.mxu0 %v599_v53  ;;  %872 = vmatprep.mubr.bf16.mxu1 %v615_v54 }
  0xfb   : > { %809 = vmatmul.mubr.bf16.gmra.mxu0 %v598_v57  ;;  %873 = vmatmul.mubr.bf16.gmra.mxu1 %v614_v58 }
  0xfc   : > { %816 = vmatprep.mubr.bf16.mxu0 %v601_v59  ;;  %880 = vmatprep.mubr.bf16.mxu1 %v617_v60  ;;  %v548_v59 = vld [vmem:[#allocation2 + $0x50] sm:$0xff] }
 0x103   : > { %817 = vmatmul.mubr.bf16.gmra.mxu0 %v600_v63  ;;  %881 = vmatmul.mubr.bf16.gmra.mxu1 %v616_v0 }
 0x104   : > { %824 = vmatprep.mubr.bf16.mxu0 %v603_v1  ;;  %888 = vmatprep.mubr.bf16.mxu1 %v619_v2 }
 0x10b   : > { %825 = vmatmul.mubr.bf16.gmra.mxu0 %v602_v5  ;;  %889 = vmatmul.mubr.bf16.gmra.mxu1 %v618_v6  ;;  %v549_v5 = vld [vmem:[#allocation2 + $0x68] sm:$0xff] }
 0x10c   : > { %832 = vmatprep.mubr.bf16.mxu0 %v605_v7  ;;  %896 = vmatprep.mubr.bf16.mxu1 %v621_v8  ;;  %v565_v7 = vld [vmem:[#allocation2 + $0x90] sm:$0xff] }
 0x113   : > { %833 = vmatmul.mubr.bf16.gmra.mxu0 %v604_v11  ;;  %897 = vmatmul.mubr.bf16.gmra.mxu1 %v620_v12 }
 0x114   : > { %840 = vmatprep.mubr.bf16.mxu0 %v607_v13  ;;  %904 = vmatprep.mubr.bf16.mxu1 %v623_v14 }
 0x11b   : > { %841 = vmatmul.mubr.bf16.gmra.mxu0 %v606_v15  ;;  %905 = vmatmul.mubr.bf16.gmra.mxu1 %v622_v16  ;;  %v550_v15 = vld [vmem:[#allocation2 + $0x30] sm:$0xff] }
 0x1a3   : > { %v2568_v17 = vpop.f32.mrf.mxu0  ;;  %v2616_v18 = vpop.f32.mrf.mxu1 }
 0x1a5   : > { %v2569_v20 = vpop.f32.mrf.mxu0  ;;  %v2617_v22 = vpop.f32.mrf.mxu1 }
 0x1a6   : > { %v2570_v23 = vadd.f32 %v2569_v20, %v2568_v17  ;;  %v2618_v24 = vadd.f32 %v2617_v22, %v2616_v18  ;;  %v566_v17 = vld [vmem:[#allocation2 + $0x70] sm:$0xff] }
 0x1a7   : > { %v2571_v25 = vpop.f32.mrf.mxu0  ;;  %v2619_v26 = vpop.f32.mrf.mxu1 }
 0x1a8   : > { %v913_v27 = vadd.f32 %v2570_v23, %v544_v19  ;;  %v929_v28 = vadd.f32 %v2618_v24, %v560_v21 }
 0x1a9   : > { %v2572_v30 = vpop.f32.mrf.mxu0  ;;  %v2620_v32 = vpop.f32.mrf.mxu1 }
 0x1aa   : > { %945 = vst [vmem:[#allocation2 + $0xb0] sm:$0xff] %v913_v27  ;;  %961 = vst [vmem:[#allocation2 + $0x38] sm:$0xff] %v929_v28  ;;  %v2573_v33 = vadd.f32 %v2572_v30, %v2571_v25  ;;  %v2621_v34 = vadd.f32 %v2620_v32, %v2619_v26  ;;  %v551_v25 = vld [vmem:[#allocation2 + $0x48] sm:$0xff]  ;;  %v567_v27 = vld [vmem:[#allocation2 + $0xc0] sm:$0xff] }
 0x1ab   : > { %v2574_v35 = vpop.f32.mrf.mxu0  ;;  %v2622_v36 = vpop.f32.mrf.mxu1 }
 0x1ac   : > { %v914_v37 = vadd.f32 %v2573_v33, %v545_v29  ;;  %v930_v38 = vadd.f32 %v2621_v34, %v561_v31 }
 0x1ad   : > { %v2575_v40 = vpop.f32.mrf.mxu0  ;;  %v2623_v42 = vpop.f32.mrf.mxu1 }
 0x1ae   : > { %946 = vst [vmem:[#allocation2] sm:$0xff] %v914_v37  ;;  %962 = vst [vmem:[#allocation2 + $0x58] sm:$0xff] %v930_v38  ;;  %v2576_v43 = vadd.f32 %v2575_v40, %v2574_v35  ;;  %v2624_v44 = vadd.f32 %v2623_v42, %v2622_v36  ;;  %v552_v35 = vld [vmem:[#allocation2 + $0x80] sm:$0xff]  ;;  %v568_v37 = vld [vmem:[#allocation2 + $0xa8] sm:$0xff] }
 0x1af   : > { %v2577_v45 = vpop.f32.mrf.mxu0  ;;  %v2625_v46 = vpop.f32.mrf.mxu1 }
 0x1b0   : > { %v915_v47 = vadd.f32 %v2576_v43, %v546_v39  ;;  %v931_v48 = vadd.f32 %v2624_v44, %v562_v41 }
 0x1b1   : > { %v2578_v50 = vpop.f32.mrf.mxu0  ;;  %v2626_v52 = vpop.f32.mrf.mxu1 }
 0x1b2   : > { %947 = vst [vmem:[#allocation2 + $0xd8] sm:$0xff] %v915_v47  ;;  %963 = vst [vmem:[#allocation2 + $0x40] sm:$0xff] %v931_v48  ;;  %v2579_v53 = vadd.f32 %v2578_v50, %v2577_v45  ;;  %v2627_v54 = vadd.f32 %v2626_v52, %v2625_v46  ;;  %v553_v45 = vld [vmem:[#allocation2 + $0x88] sm:$0xff]  ;;  %v569_v47 = vld [vmem:[#allocation2 + $0xd0] sm:$0xff] }
 0x1b3   : > { %v2580_v55 = vpop.f32.mrf.mxu0  ;;  %v2628_v56 = vpop.f32.mrf.mxu1 }
 0x1b4   : > { %v916_v57 = vadd.f32 %v2579_v53, %v547_v49  ;;  %v932_v58 = vadd.f32 %v2627_v54, %v563_v51 }
 0x1b5   : > { %v2581_v60 = vpop.f32.mrf.mxu0  ;;  %v2629_v62 = vpop.f32.mrf.mxu1 }
 0x1b6   : > { %948 = vst [vmem:[#allocation2 + $0x18] sm:$0xff] %v916_v57  ;;  %964 = vst [vmem:[#allocation2 + $0xc8] sm:$0xff] %v932_v58  ;;  %v2582_v63 = vadd.f32 %v2581_v60, %v2580_v55  ;;  %v2630_v0 = vadd.f32 %v2629_v62, %v2628_v56  ;;  %v554_v55 = vld [vmem:[#allocation2 + $0xe8] sm:$0xff]  ;;  %v570_v57 = vld [vmem:[#allocation2 + $0x10] sm:$0xff] }
 0x1b7   : > { %v2583_v1 = vpop.f32.mrf.mxu0  ;;  %v2631_v2 = vpop.f32.mrf.mxu1 }
 0x1b8   : > { %v917_v3 = vadd.f32 %v2582_v63, %v548_v59  ;;  %v933_v4 = vadd.f32 %v2630_v0, %v564_v61 }
 0x1b9   : > { %v2584_v6 = vpop.f32.mrf.mxu0  ;;  %v2632_v8 = vpop.f32.mrf.mxu1 }
 0x1ba   : > { %949 = vst [vmem:[#allocation2 + $0x50] sm:$0xff] %v917_v3  ;;  %965 = vst [vmem:[#allocation2 + $0xe0] sm:$0xff] %v933_v4  ;;  %v2585_v9 = vadd.f32 %v2584_v6, %v2583_v1  ;;  %v2633_v10 = vadd.f32 %v2632_v8, %v2631_v2  ;;  %v555_v1 = vld [vmem:[#allocation2 + $0xb8] sm:$0xff]  ;;  %v571_v3 = vld [vmem:[#allocation2 + $0x28] sm:$0xff] }
 0x1bb   : > { %v2586_v11 = vpop.f32.mrf.mxu0  ;;  %v2634_v12 = vpop.f32.mrf.mxu1 }
 0x1bc   : > { %v918_v13 = vadd.f32 %v2585_v9, %v549_v5  ;;  %v934_v14 = vadd.f32 %v2633_v10, %v565_v7 }
 0x1bd   : > { %v2587_v16 = vpop.f32.mrf.mxu0  ;;  %v2635_v18 = vpop.f32.mrf.mxu1 }
 0x1be   : > { %950 = vst [vmem:[#allocation2 + $0x68] sm:$0xff] %v918_v13  ;;  %966 = vst [vmem:[#allocation2 + $0x90] sm:$0xff] %v934_v14  ;;  %v2588_v19 = vadd.f32 %v2587_v16, %v2586_v11  ;;  %v2636_v20 = vadd.f32 %v2635_v18, %v2634_v12  ;;  %v556_v11 = vld [vmem:[#allocation2 + $0x60] sm:$0xff] }
 0x1bf   : > { %v2589_v21 = vpop.f32.mrf.mxu0  ;;  %v2637_v22 = vpop.f32.mrf.mxu1  ;;  %v572_v13 = vld [vmem:[#allocation2 + $0xa0] sm:$0xff] }
 0x1c0   : > { %v919_v23 = vadd.f32 %v2588_v19, %v550_v15  ;;  %v935_v24 = vadd.f32 %v2636_v20, %v566_v17 }
 0x1c1   : > { %v2590_v26 = vpop.f32.mrf.mxu0  ;;  %v2638_v28 = vpop.f32.mrf.mxu1 }
 0x1c2   : > { %951 = vst [vmem:[#allocation2 + $0x30] sm:$0xff] %v919_v23  ;;  %967 = vst [vmem:[#allocation2 + $0x70] sm:$0xff] %v935_v24  ;;  %v2591_v29 = vadd.f32 %v2590_v26, %v2589_v21  ;;  %v2639_v30 = vadd.f32 %v2638_v28, %v2637_v22  ;;  %v557_v21 = vld [vmem:[#allocation2 + $0xf0] sm:$0xff]  ;;  %v573_v23 = vld [vmem:[#allocation2 + $0xf8] sm:$0xff] }
 0x1c3   : > { %v2592_v31 = vpop.f32.mrf.mxu0  ;;  %v2640_v32 = vpop.f32.mrf.mxu1 }
 0x1c4   : > { %v920_v33 = vadd.f32 %v2591_v29, %v551_v25  ;;  %v936_v34 = vadd.f32 %v2639_v30, %v567_v27 }
 0x1c5   : > { %v2593_v36 = vpop.f32.mrf.mxu0  ;;  %v2641_v38 = vpop.f32.mrf.mxu1 }
 0x1c6   : > { %952 = vst [vmem:[#allocation2 + $0x48] sm:$0xff] %v920_v33  ;;  %968 = vst [vmem:[#allocation2 + $0xc0] sm:$0xff] %v936_v34  ;;  %v2594_v39 = vadd.f32 %v2593_v36, %v2592_v31  ;;  %v2642_v40 = vadd.f32 %v2641_v38, %v2640_v32  ;;  %v558_v31 = vld [vmem:[#allocation2 + $0x8] sm:$0xff]  ;;  %v574_v33 = vld [vmem:[#allocation2 + $0x20] sm:$0xff] }
 0x1c7   : > { %v2595_v41 = vpop.f32.mrf.mxu0  ;;  %v2643_v42 = vpop.f32.mrf.mxu1 }
 0x1c8   : > { %v921_v43 = vadd.f32 %v2594_v39, %v552_v35  ;;  %v937_v44 = vadd.f32 %v2642_v40, %v568_v37 }
 0x1c9   : > { %v2596_v46 = vpop.f32.mrf.mxu0  ;;  %v2644_v48 = vpop.f32.mrf.mxu1 }
 0x1ca   : > { %953 = vst [vmem:[#allocation2 + $0x80] sm:$0xff] %v921_v43  ;;  %969 = vst [vmem:[#allocation2 + $0xa8] sm:$0xff] %v937_v44  ;;  %v2597_v49 = vadd.f32 %v2596_v46, %v2595_v41  ;;  %v2645_v50 = vadd.f32 %v2644_v48, %v2643_v42  ;;  %v559_v41 = vld [vmem:[#allocation2 + $0x78] sm:$0xff] }
 0x1cb   : > { %v2598_v51 = vpop.f32.mrf.mxu0  ;;  %v2646_v52 = vpop.f32.mrf.mxu1  ;;  %v575_v43 = vld [vmem:[#allocation2 + $0x98] sm:$0xff] }
 0x1cc   : > { %v922_v53 = vadd.f32 %v2597_v49, %v553_v45  ;;  %v938_v54 = vadd.f32 %v2645_v50, %v569_v47 }
 0x1cd   : > { %v2599_v56 = vpop.f32.mrf.mxu0  ;;  %v2647_v58 = vpop.f32.mrf.mxu1 }
 0x1ce   : > { %954 = vst [vmem:[#allocation2 + $0x88] sm:$0xff] %v922_v53  ;;  %970 = vst [vmem:[#allocation2 + $0xd0] sm:$0xff] %v938_v54  ;;  %v2600_v59 = vadd.f32 %v2599_v56, %v2598_v51  ;;  %v2648_v60 = vadd.f32 %v2647_v58, %v2646_v52 }
 0x1cf   : > { %v2601_v61 = vpop.f32.mrf.mxu0  ;;  %v2649_v62 = vpop.f32.mrf.mxu1 }
 0x1d0   : > { %v923_v63 = vadd.f32 %v2600_v59, %v554_v55  ;;  %v939_v0 = vadd.f32 %v2648_v60, %v570_v57 }
 0x1d1   : > { %v2602_v2 = vpop.f32.mrf.mxu0  ;;  %v2650_v4 = vpop.f32.mrf.mxu1 }
 0x1d2   : > { %955 = vst [vmem:[#allocation2 + $0xe8] sm:$0xff] %v923_v63  ;;  %971 = vst [vmem:[#allocation2 + $0x10] sm:$0xff] %v939_v0  ;;  %v2603_v5 = vadd.f32 %v2602_v2, %v2601_v61  ;;  %v2651_v6 = vadd.f32 %v2650_v4, %v2649_v62 }
 0x1d3   : > { %v2604_v7 = vpop.f32.mrf.mxu0  ;;  %v2652_v8 = vpop.f32.mrf.mxu1 }
 0x1d4   : > { %v924_v9 = vadd.f32 %v2603_v5, %v555_v1  ;;  %v940_v10 = vadd.f32 %v2651_v6, %v571_v3 }
 0x1d5   : > { %v2605_v12 = vpop.f32.mrf.mxu0  ;;  %v2653_v14 = vpop.f32.mrf.mxu1 }
 0x1d6   : > { %956 = vst [vmem:[#allocation2 + $0xb8] sm:$0xff] %v924_v9  ;;  %972 = vst [vmem:[#allocation2 + $0x28] sm:$0xff] %v940_v10  ;;  %v2606_v15 = vadd.f32 %v2605_v12, %v2604_v7  ;;  %v2654_v16 = vadd.f32 %v2653_v14, %v2652_v8 }
 0x1d7   : > { %v2607_v17 = vpop.f32.mrf.mxu0  ;;  %v2655_v18 = vpop.f32.mrf.mxu1 }
 0x1d8   : > { %v925_v19 = vadd.f32 %v2606_v15, %v556_v11  ;;  %v941_v20 = vadd.f32 %v2654_v16, %v572_v13 }
 0x1d9   : > { %v2608_v22 = vpop.f32.mrf.mxu0  ;;  %v2656_v24 = vpop.f32.mrf.mxu1 }
 0x1da   : > { %957 = vst [vmem:[#allocation2 + $0x60] sm:$0xff] %v925_v19  ;;  %973 = vst [vmem:[#allocation2 + $0xa0] sm:$0xff] %v941_v20  ;;  %v2609_v25 = vadd.f32 %v2608_v22, %v2607_v17  ;;  %v2657_v26 = vadd.f32 %v2656_v24, %v2655_v18 }
 0x1db   : > { %v2610_v27 = vpop.f32.mrf.mxu0  ;;  %v2658_v28 = vpop.f32.mrf.mxu1 }
 0x1dc   : > { %v926_v29 = vadd.f32 %v2609_v25, %v557_v21  ;;  %v942_v30 = vadd.f32 %v2657_v26, %v573_v23 }
 0x1dd   : > { %v2611_v32 = vpop.f32.mrf.mxu0  ;;  %v2659_v34 = vpop.f32.mrf.mxu1 }
 0x1de   : > { %958 = vst [vmem:[#allocation2 + $0xf0] sm:$0xff] %v926_v29  ;;  %974 = vst [vmem:[#allocation2 + $0xf8] sm:$0xff] %v942_v30  ;;  %v2612_v35 = vadd.f32 %v2611_v32, %v2610_v27  ;;  %v2660_v36 = vadd.f32 %v2659_v34, %v2658_v28 }
 0x1df   : > { %v2613_v37 = vpop.f32.mrf.mxu0  ;;  %v2661_v38 = vpop.f32.mrf.mxu1 }
 0x1e0   : > { %v927_v39 = vadd.f32 %v2612_v35, %v558_v31  ;;  %v943_v40 = vadd.f32 %v2660_v36, %v574_v33 }
 0x1e1   : > { %v2614_v42 = vpop.f32.mrf.mxu0  ;;  %v2662_v44 = vpop.f32.mrf.mxu1 }
 0x1e2   : > { %959 = vst [vmem:[#allocation2 + $0x8] sm:$0xff] %v927_v39  ;;  %975 = vst [vmem:[#allocation2 + $0x20] sm:$0xff] %v943_v40  ;;  %v2615_v45 = vadd.f32 %v2614_v42, %v2613_v37  ;;  %v2663_v46 = vadd.f32 %v2662_v44, %v2661_v38  ;;  %980 = sbr.rel (%p2349_p9) target bundleno = 887 (0x377), region = 99 }
 0x1e4   : > { %v928_v47 = vadd.f32 %v2615_v45, %v559_v41  ;;  %v944_v48 = vadd.f32 %v2663_v46, %v575_v43 }
 0x1e6   : > { %960 = vst [vmem:[#allocation2 + $0x78] sm:$0xff] %v928_v47  ;;  %976 = vst [vmem:[#allocation2 + $0x98] sm:$0xff] %v944_v48 }
 0x1e7   : > { %v1015_v49 = vld [vmem:[%s3587_s20 + $0x10] sm:$0xff]  ;;  %v1013_v50 = vld [vmem:[%s3587_s20] sm:$0xff]  ;;  %v3281_v51 = vmov 0   ;;  %v1016_v52 = vld [vmem:[%s3587_s20 + $0x18] sm:$0xff] }
 0x1e8   : > { %2985 = vset.pattern.permute.xlu1 %v3281_v51  ;;  %2984 = vset.pattern.permute.xlu0 %v3281_v51  ;;  %v1014_v53 = vld [vmem:[%s3587_s20 + $0x8] sm:$0xff]  ;;  %v1017_v55 = vld [vmem:[%s3587_s20 + $0x20] sm:$0xff]  ;;  %v1020_v56 = vld [vmem:[%s3587_s20 + $0x38] sm:$0xff] }
 0x1e9   : > { %1057 = vperm.xlu1 %2985, %v1015_v49   ;;  %1047 = vperm.xlu0 %2984, %v1013_v50   ;;  %v1018_v54 = vld [vmem:[%s3587_s20 + $0x28] sm:$0xff]  ;;  %v1019_v57 = vld [vmem:[%s3587_s20 + $0x30] sm:$0xff]  ;;  %v2986_v58 = vld [vmem:[#allocation10 + $0x38] sm:$0xff]  }
 0x1ea   : > { %v2987_v59 = vld [vmem:[#allocation10 + $0x30] sm:$0xff]   ;;  %v1022_v60 = vld [vmem:[%s3587_s20 + $0x48] sm:$0xff]  ;;  %2712 = vmatprep.subr.bf16.mxu0 %v2986_v58  ;;  %v2988_v61 = vld [vmem:[#allocation9 + $0x38] sm:$0xff]  }
 0x1eb   : > { %v1021_v62 = vld [vmem:[%s3587_s20 + $0x40] sm:$0xff]  ;;  %2713 = vmatpush3.bf16.msra.mxu0 %v2986_v58  ;;  %2760 = vmatprep.subr.bf16.mxu1 %v2988_v61  ;;  %v2990_v63 = vld [vmem:[#allocation9 + $0x30] sm:$0xff]   ;;  %v2989_v0 = vld [vmem:[#allocation10 + $0x28] sm:$0xff]  }
 0x1ec   : > { %2714 = vmatprep.subr.bf16.mxu0 %v2987_v59  ;;  %2761 = vmatpush3.bf16.msra.mxu1 %v2988_v61  ;;  %v2992_v1 = vld [vmem:[#allocation9 + $0x28] sm:$0xff]   ;;  %v1024_v2 = vld [vmem:[%s3587_s20 + $0x58] sm:$0xff]  ;;  %v1023_v3 = vld [vmem:[%s3587_s20 + $0x50] sm:$0xff] }
 0x1ed   : > { %1062 = vperm.xlu1 %2985, %v1016_v52   ;;  %1052 = vperm.xlu0 %2984, %v1014_v53   ;;  %v2991_v4 = vld [vmem:[#allocation10 + $0x20] sm:$0xff]   ;;  %v1026_v6 = vld [vmem:[%s3587_s20 + $0x68] sm:$0xff]  ;;  %v2993_v8 = vld [vmem:[#allocation10 + $0x18] sm:$0xff]  }
 0x1ee   : > { %2762 = vmatprep.subr.bf16.mxu1 %v2990_v63  ;;  %v2994_v5 = vld [vmem:[#allocation9 + $0x20] sm:$0xff]   ;;  %v1028_v9 = vld [vmem:[%s3587_s20 + $0x78] sm:$0xff]  ;;  %v1027_v11 = vld [vmem:[%s3587_s20 + $0x70] sm:$0xff] }
 0x1ef   : > { %2715 = vmatpush3.bf16.msra.mxu0 %v2987_v59  ;;  %v1025_v7 = vld [vmem:[%s3587_s20 + $0x60] sm:$0xff]  ;;  %v2996_v10 = vld [vmem:[#allocation9 + $0x18] sm:$0xff]   ;;  %v2995_v13 = vld [vmem:[#allocation10 + $0x10] sm:$0xff]  }
 0x1f0   : > { %2716 = vmatprep.subr.bf16.mxu0 %v2989_v0  ;;  %2763 = vmatpush3.bf16.msra.mxu1 %v2990_v63  ;;  %v3001_v12 = vld [vmem:[%s3569_s6] sm:$0xff]   ;;  %v2998_v14 = vld [vmem:[#allocation9 + $0x10] sm:$0xff]   ;;  %v1030_v15 = vld [vmem:[%s3587_s20 + $0x88] sm:$0xff] }
 0x1f1   : > { %1072 = vperm.xlu1 %2985, %v1018_v54   ;;  %1067 = vperm.xlu0 %2984, %v1017_v55   ;;  %v1029_v16 = vld [vmem:[%s3587_s20 + $0x80] sm:$0xff]  ;;  %v2997_v17 = vld [vmem:[#allocation10 + $0x8] sm:$0xff]   ;;  %v1032_v19 = vld [vmem:[%s3587_s20 + $0x98] sm:$0xff] }
 0x1f2   : > { %2764 = vmatprep.subr.bf16.mxu1 %v2992_v1  ;;  %2728 = vmatprep.mubr.bf16.mxu0 %v3001_v12  ;;  %v3000_v18 = vld [vmem:[#allocation9 + $0x8] sm:$0xff]   ;;  %v1031_v20 = vld [vmem:[%s3587_s20 + $0x90] sm:$0xff]  ;;  %v2999_v21 = vld [vmem:[#allocation10] sm:$0xff]  }
 0x1f3   : > { %2717 = vmatpush3.bf16.msra.mxu0 %v2989_v0  ;;  %v3003_v22 = vld [vmem:[#allocation9] sm:$0xff]   ;;  %v1034_v23 = vld [vmem:[%s3587_s20 + $0xa8] sm:$0xff]  ;;  %v1036_v25 = vld [vmem:[%s3587_s20 + $0xb8] sm:$0xff] }
 0x1f4   : > { %2718 = vmatprep.subr.bf16.mxu0 %v2991_v4  ;;  %2765 = vmatpush3.bf16.msra.mxu1 %v2992_v1  ;;  %v1033_v24 = vld [vmem:[%s3587_s20 + $0xa0] sm:$0xff]  ;;  %v1035_v26 = vld [vmem:[%s3587_s20 + $0xb0] sm:$0xff]  ;;  %v3002_v27 = vld [vmem:[%s3569_s6 + $0x8] sm:$0xff]  }
 0x1f5   : > { %1082 = vperm.xlu1 %2985, %v1020_v56   ;;  %1077 = vperm.xlu0 %2984, %v1019_v57   ;;  %v3004_v28 = vld [vmem:[%s3569_s6 + $0x10] sm:$0xff]   ;;  %v1038_v29 = vld [vmem:[%s3587_s20 + $0xc8] sm:$0xff]  ;;  %v1037_v30 = vld [vmem:[%s3587_s20 + $0xc0] sm:$0xff] }
 0x1f6   : > { %2766 = vmatprep.subr.bf16.mxu1 %v2994_v5  ;;  %v1040_v31 = vld [vmem:[%s3587_s20 + $0xd8] sm:$0xff]  ;;  %v1039_v32 = vld [vmem:[%s3587_s20 + $0xd0] sm:$0xff]  ;;  %v3006_v34 = vld [vmem:[%s3569_s6 + $0x20] sm:$0xff]  }
 0x1f7   : > { %2719 = vmatpush3.bf16.msra.mxu0 %v2991_v4  ;;  %v3005_v33 = vld [vmem:[%s3569_s6 + $0x18] sm:$0xff]   ;;  %v1042_v35 = vld [vmem:[%s3587_s20 + $0xe8] sm:$0xff]  ;;  %v1041_v36 = vld [vmem:[%s3587_s20 + $0xe0] sm:$0xff] }
 0x1f8   : > { %2720 = vmatprep.subr.bf16.mxu0 %v2993_v8  ;;  %2767 = vmatpush3.bf16.msra.mxu1 %v2994_v5  ;;  %v1044_v37 = vld [vmem:[%s3587_s20 + $0xf8] sm:$0xff]  ;;  %v1043_v38 = vld [vmem:[%s3587_s20 + $0xf0] sm:$0xff]  ;;  %v3007_v39 = vld [vmem:[%s3569_s6 + $0x28] sm:$0xff]  }
 0x1f9   : > { %1092 = vperm.xlu1 %2985, %v1022_v60   ;;  %1087 = vperm.xlu0 %2984, %v1021_v62   ;;  %v3008_v40 = vld [vmem:[%s3569_s6 + $0x30] sm:$0xff]   ;;  %v3009_v41 = vld [vmem:[%s3569_s6 + $0x38] sm:$0xff]   ;;  %v3010_v42 = vld [vmem:[%s3569_s6 + $0x40] sm:$0xff]  }
 0x1fa   : > { %2768 = vmatprep.subr.bf16.mxu1 %v2996_v10  ;;  %v3011_v43 = vld [vmem:[%s3569_s6 + $0x48] sm:$0xff]   ;;  %v3012_v44 = vld [vmem:[%s3569_s6 + $0x50] sm:$0xff]   ;;  %v3013_v45 = vld [vmem:[%s3569_s6 + $0x58] sm:$0xff]  }
 0x1fb   : > { %2721 = vmatpush3.bf16.msra.mxu0 %v2993_v8  ;;  %v3014_v46 = vld [vmem:[%s3569_s6 + $0x60] sm:$0xff]   ;;  %v3015_v47 = vld [vmem:[%s3569_s6 + $0x68] sm:$0xff]   ;;  %v3016_v48 = vld [vmem:[%s3569_s6 + $0x70] sm:$0xff]  }
 0x1fc   : > { %2722 = vmatprep.subr.bf16.mxu0 %v2995_v13  ;;  %2769 = vmatpush3.bf16.msra.mxu1 %v2996_v10  ;;  %v3017_v49 = vld [vmem:[%s3569_s6 + $0x78] sm:$0xff]   ;;  %v981_v53 = vld [vmem:[#allocation2 + $0xb0] sm:$0xff]  ;;  %v982_v55 = vld [vmem:[#allocation2] sm:$0xff] }
 0x1fd   : > { %1102 = vperm.xlu1 %2985, %v1024_v2   ;;  %1097 = vperm.xlu0 %2984, %v1023_v3   ;;  %v983_v52 = vld [vmem:[#allocation2 + $0xd8] sm:$0xff]  ;;  %v986_v62 = vld [vmem:[#allocation2 + $0x68] sm:$0xff]  ;;  %v985_v63 = vld [vmem:[#allocation2 + $0x50] sm:$0xff] }
 0x1fe   : > { %2770 = vmatprep.subr.bf16.mxu1 %v2998_v14  ;;  %v984_v54 = vld [vmem:[#allocation2 + $0x18] sm:$0xff] }
 0x1ff   : > { %2723 = vmatpush3.bf16.msra.mxu0 %v2995_v13  ;;  %v990_v13 = vld [vmem:[#allocation2 + $0x88] sm:$0xff] }
 0x200   : > { %2724 = vmatprep.subr.bf16.mxu0 %v2997_v17  ;;  %2771 = vmatpush3.bf16.msra.mxu1 %v2998_v14  ;;  %v989_v14 = vld [vmem:[#allocation2 + $0x80] sm:$0xff] }
 0x201   : > { %1112 = vperm.xlu1 %2985, %v1026_v6   ;;  %1107 = vperm.xlu0 %2984, %v1025_v7   ;;  %v988_v6 = vld [vmem:[#allocation2 + $0x48] sm:$0xff]  ;;  %v987_v7 = vld [vmem:[#allocation2 + $0x30] sm:$0xff] }
 0x202   : > { %2772 = vmatprep.subr.bf16.mxu1 %v3000_v18 }
 0x203   : > { %2725 = vmatpush3.bf16.msra.mxu0 %v2997_v17 }
 0x204   : > { %2726 = vmatprep.subr.bf16.mxu0 %v2999_v21  ;;  %2773 = vmatpush3.bf16.msra.mxu1 %v3000_v18 }
 0x205   : > { %1122 = vperm.xlu1 %2985, %v1028_v9   ;;  %1117 = vperm.xlu0 %2984, %v1027_v11  }
 0x206   : > { %2774 = vmatprep.subr.bf16.mxu1 %v3003_v22 }
 0x207   : > { %2727 = vmatpush3.bf16.msra.mxu0 %v2999_v21  ;;  %v991_v21 = vld [vmem:[#allocation2 + $0xe8] sm:$0xff] }
 0x208   : > { %2775 = vmatpush3.bf16.msra.mxu1 %v3003_v22 }
 0x209   : > { %1132 = vperm.xlu1 %2985, %v1030_v15   ;;  %1127 = vperm.xlu0 %2984, %v1029_v16  }
 0x20a   : > { %2729 = vmatmul.mubr.bf16.vlgmr.msra.gmra.mxu0 %v3002_v27  ;;  %v994_v27 = vld [vmem:[#allocation2 + $0xf0] sm:$0xff] }
 0x20b   : > { %2732 = vmatprep.mubr.bf16.mxu0 %v3004_v28  ;;  %v993_v28 = vld [vmem:[#allocation2 + $0x60] sm:$0xff] }
 0x20d   : > { %1142 = vperm.xlu1 %2985, %v1032_v19   ;;  %1137 = vperm.xlu0 %2984, %v1031_v20   ;;  %v992_v20 = vld [vmem:[#allocation2 + $0xb8] sm:$0xff] }
 0x211   : > { %1152 = vperm.xlu1 %2985, %v1034_v23   ;;  %1147 = vperm.xlu0 %2984, %v1033_v24  }
 0x212   : > { %2733 = vmatmul.mubr.bf16.gmra.mxu0 %v3005_v33 }
 0x213   : > { %2736 = vmatprep.mubr.bf16.mxu0 %v3006_v34  ;;  %v996_v34 = vld [vmem:[#allocation2 + $0x78] sm:$0xff] }
 0x215   : > { %1162 = vperm.xlu1 %2985, %v1036_v25   ;;  %1157 = vperm.xlu0 %2984, %v1035_v26  }
 0x219   : > { %1172 = vperm.xlu1 %2985, %v1038_v29   ;;  %1167 = vperm.xlu0 %2984, %v1037_v30  }
 0x21a   : > { %2737 = vmatmul.mubr.bf16.gmra.mxu0 %v3007_v39 }
 0x21b   : > { %2740 = vmatprep.mubr.bf16.mxu0 %v3008_v40 }
 0x21d   : > { %1182 = vperm.xlu1 %2985, %v1040_v31   ;;  %1177 = vperm.xlu0 %2984, %v1039_v32  }
 0x221   : > { %1192 = vperm.xlu1 %2985, %v1042_v35   ;;  %1187 = vperm.xlu0 %2984, %v1041_v36   ;;  %v995_v35 = vld [vmem:[#allocation2 + $0x8] sm:$0xff] }
 0x222   : > { %2741 = vmatmul.mubr.bf16.gmra.mxu0 %v3009_v41  ;;  %v998_v41 = vld [vmem:[#allocation2 + $0x58] sm:$0xff] }
 0x223   : > { %2744 = vmatprep.mubr.bf16.mxu0 %v3010_v42  ;;  %v997_v42 = vld [vmem:[#allocation2 + $0x38] sm:$0xff] }
 0x225   : > { %1202 = vperm.xlu1 %2985, %v1044_v37   ;;  %1197 = vperm.xlu0 %2984, %v1043_v38  }
 0x22a   : > { %2745 = vmatmul.mubr.bf16.gmra.mxu0 %v3011_v43 }
 0x22b   : > { %2748 = vmatprep.mubr.bf16.mxu0 %v3012_v44 }
 0x232   : > { %2749 = vmatmul.mubr.bf16.gmra.mxu0 %v3013_v45 }
 0x233   : > { %2752 = vmatprep.mubr.bf16.mxu0 %v3014_v46 }
 0x23a   : > { %2753 = vmatmul.mubr.bf16.gmra.mxu0 %v3015_v47 }
 0x23b   : > { %2756 = vmatprep.mubr.bf16.mxu0 %v3016_v48  ;;  %v1000_v48 = vld [vmem:[#allocation2 + $0xc8] sm:$0xff] }
 0x242   : > { %2757 = vmatmul.mubr.bf16.gmra.mxu0 %v3017_v49  ;;  %v999_v49 = vld [vmem:[#allocation2 + $0x40] sm:$0xff] }
 0x264   : > { %v1058_v50 = vpop.permute.xlu1 %1057  ;;  %v1048_v51 = vpop.permute.xlu0 %1047 }
 0x265   : > { %v1207_v58 = vmul.f32 %v1058_v50, %v983_v52  ;;  %v1205_v59 = vmul.f32 %v1048_v51, %v981_v53 }
 0x268   : > { %v1063_v56 = vpop.permute.xlu1 %1062  ;;  %v1053_v57 = vpop.permute.xlu0 %1052 }
 0x269   : > { %v1208_v60 = vmul.f32 %v1063_v56, %v984_v54  ;;  %v1206_v61 = vmul.f32 %v1053_v57, %v982_v55  ;;  %v1002_v55 = vld [vmem:[#allocation2 + $0x90] sm:$0xff]  ;;  %v1001_v56 = vld [vmem:[#allocation2 + $0xe0] sm:$0xff] }
 0x26b   : > { %v1238_v0 = vpack.c.bf16 %v1208_v60, %v1207_v58  ;;  %v1237_v1 = vpack.c.bf16 %v1206_v61, %v1205_v59 }
 0x26c   : > { %v1073_v2 = vpop.permute.xlu1 %1072  ;;  %v1068_v3 = vpop.permute.xlu0 %1067 }
 0x26d   : > { %v1210_v4 = vmul.f32 %v1073_v2, %v986_v62  ;;  %v1209_v5 = vmul.f32 %v1068_v3, %v985_v63  ;;  %2776 = vmatprep.mubr.bf16.mxu1 %v1237_v1  ;;  %v1004_v62 = vld [vmem:[#allocation2 + $0xc0] sm:$0xff]  ;;  %v1003_v63 = vld [vmem:[#allocation2 + $0x70] sm:$0xff] }
 0x26e   : > { %2777 = vmatmul.mubr.bf16.vlgmr.msra.gmra.mxu1 %v1238_v0 }
 0x26f   : > { %v1239_v8 = vpack.c.bf16 %v1210_v4, %v1209_v5  ;;  %v1006_v5 = vld [vmem:[#allocation2 + $0xd0] sm:$0xff] }
 0x270   : > { %v1083_v9 = vpop.permute.xlu1 %1082  ;;  %v1078_v10 = vpop.permute.xlu0 %1077 }
 0x271   : > { %v1212_v11 = vmul.f32 %v1083_v9, %v988_v6  ;;  %v1211_v12 = vmul.f32 %v1078_v10, %v987_v7  ;;  %2780 = vmatprep.mubr.bf16.mxu1 %v1239_v8  ;;  %v1005_v6 = vld [vmem:[#allocation2 + $0xa8] sm:$0xff] }
 0x273   : > { %v1240_v15 = vpack.c.bf16 %v1212_v11, %v1211_v12  ;;  %v1008_v12 = vld [vmem:[#allocation2 + $0x28] sm:$0xff] }
 0x274   : > { %v1093_v16 = vpop.permute.xlu1 %1092  ;;  %v1088_v17 = vpop.permute.xlu0 %1087 }
 0x275   : > { %v1214_v18 = vmul.f32 %v1093_v16, %v990_v13  ;;  %v1213_v19 = vmul.f32 %v1088_v17, %v989_v14  ;;  %v1007_v13 = vld [vmem:[#allocation2 + $0x10] sm:$0xff] }
 0x276   : > { %2781 = vmatmul.mubr.bf16.gmra.mxu1 %v1240_v15 }
 0x277   : > { %v1241_v22 = vpack.c.bf16 %v1214_v18, %v1213_v19  ;;  %v1010_v19 = vld [vmem:[#allocation2 + $0xf8] sm:$0xff] }
 0x278   : > { %v1103_v23 = vpop.permute.xlu1 %1102  ;;  %v1098_v24 = vpop.permute.xlu0 %1097 }
 0x279   : > { %v1216_v25 = vmul.f32 %v1103_v23, %v992_v20  ;;  %v1215_v26 = vmul.f32 %v1098_v24, %v991_v21  ;;  %2784 = vmatprep.mubr.bf16.mxu1 %v1241_v22  ;;  %v1009_v20 = vld [vmem:[#allocation2 + $0xa0] sm:$0xff] }
 0x27b   : > { %v1242_v29 = vpack.c.bf16 %v1216_v25, %v1215_v26  ;;  %v1012_v26 = vld [vmem:[#allocation2 + $0x98] sm:$0xff] }
 0x27c   : > { %v1113_v30 = vpop.permute.xlu1 %1112  ;;  %v1108_v31 = vpop.permute.xlu0 %1107 }
 0x27d   : > { %v1218_v32 = vmul.f32 %v1113_v30, %v994_v27  ;;  %v1217_v33 = vmul.f32 %v1108_v31, %v993_v28  ;;  %v1011_v27 = vld [vmem:[#allocation2 + $0x20] sm:$0xff] }
 0x27e   : > { %2785 = vmatmul.mubr.bf16.gmra.mxu1 %v1242_v29 }
 0x27f   : > { %v1243_v36 = vpack.c.bf16 %v1218_v32, %v1217_v33 }
 0x280   : > { %v1123_v37 = vpop.permute.xlu1 %1122  ;;  %v1118_v38 = vpop.permute.xlu0 %1117 }
 0x281   : > { %v1220_v39 = vmul.f32 %v1123_v37, %v996_v34  ;;  %v1219_v40 = vmul.f32 %v1118_v38, %v995_v35  ;;  %2788 = vmatprep.mubr.bf16.mxu1 %v1243_v36 }
 0x283   : > { %v1244_v43 = vpack.c.bf16 %v1220_v39, %v1219_v40 }
 0x284   : > { %v1133_v44 = vpop.permute.xlu1 %1132  ;;  %v1128_v45 = vpop.permute.xlu0 %1127 }
 0x285   : > { %v1222_v46 = vmul.f32 %v1133_v44, %v998_v41  ;;  %v1221_v47 = vmul.f32 %v1128_v45, %v997_v42 }
 0x286   : > { %2789 = vmatmul.mubr.bf16.gmra.mxu1 %v1244_v43 }
 0x287   : > { %v1245_v50 = vpack.c.bf16 %v1222_v46, %v1221_v47 }
 0x288   : > { %v1143_v51 = vpop.permute.xlu1 %1142  ;;  %v1138_v52 = vpop.permute.xlu0 %1137 }
 0x289   : > { %v1224_v53 = vmul.f32 %v1143_v51, %v1000_v48  ;;  %v1223_v54 = vmul.f32 %v1138_v52, %v999_v49  ;;  %2792 = vmatprep.mubr.bf16.mxu1 %v1245_v50  ;;  %v3690_v51 = vld [vmem:[%s3966_s28] ss:$0 sm:$0xff] }
 0x28b   : > { %v1246_v57 = vpack.c.bf16 %v1224_v53, %v1223_v54 }
 0x28c   : > { %v1153_v58 = vpop.permute.xlu1 %1152  ;;  %v1148_v59 = vpop.permute.xlu0 %1147 }
 0x28d   : > { %v1226_v60 = vmul.f32 %v1153_v58, %v1002_v55  ;;  %v1225_v61 = vmul.f32 %v1148_v59, %v1001_v56 }
 0x28e   : > { %2793 = vmatmul.mubr.bf16.gmra.mxu1 %v1246_v57  ;;  %v3698_v57 = vld [vmem:[%s3967_s30] ss:$0 sm:$0xff] }
 0x28f   : > { %v1247_v0 = vpack.c.bf16 %v1226_v60, %v1225_v61 }
 0x290   : > { %v1163_v1 = vpop.permute.xlu1 %1162  ;;  %v1158_v2 = vpop.permute.xlu0 %1157 }
 0x291   : > { %v1228_v3 = vmul.f32 %v1163_v1, %v1004_v62  ;;  %v1227_v4 = vmul.f32 %v1158_v2, %v1003_v63  ;;  %2796 = vmatprep.mubr.bf16.mxu1 %v1247_v0 }
 0x293   : > { %v1248_v7 = vpack.c.bf16 %v1228_v3, %v1227_v4 }
 0x294   : > { %v1173_v8 = vpop.permute.xlu1 %1172  ;;  %v1168_v9 = vpop.permute.xlu0 %1167 }
 0x295   : > { %v1230_v10 = vmul.f32 %v1173_v8, %v1006_v5  ;;  %v1229_v11 = vmul.f32 %v1168_v9, %v1005_v6 }
 0x296   : > { %2797 = vmatmul.mubr.bf16.gmra.mxu1 %v1248_v7 }
 0x297   : > { %v1249_v14 = vpack.c.bf16 %v1230_v10, %v1229_v11 }
 0x298   : > { %v1183_v15 = vpop.permute.xlu1 %1182  ;;  %v1178_v16 = vpop.permute.xlu0 %1177 }
 0x299   : > { %v1232_v17 = vmul.f32 %v1183_v15, %v1008_v12  ;;  %v1231_v18 = vmul.f32 %v1178_v16, %v1007_v13  ;;  %2800 = vmatprep.mubr.bf16.mxu1 %v1249_v14 }
 0x29b   : > { %v1250_v21 = vpack.c.bf16 %v1232_v17, %v1231_v18 }
 0x29c   : > { %v1193_v22 = vpop.permute.xlu1 %1192  ;;  %v1188_v23 = vpop.permute.xlu0 %1187 }
 0x29d   : > { %v1234_v24 = vmul.f32 %v1193_v22, %v1010_v19  ;;  %v1233_v25 = vmul.f32 %v1188_v23, %v1009_v20 }
 0x29e   : > { %2801 = vmatmul.mubr.bf16.gmra.mxu1 %v1250_v21 }
 0x29f   : > { %v1251_v28 = vpack.c.bf16 %v1234_v24, %v1233_v25 }
 0x2a0   : > { %v1203_v29 = vpop.permute.xlu1 %1202  ;;  %v1198_v30 = vpop.permute.xlu0 %1197 }
 0x2a1   : > { %v1236_v31 = vmul.f32 %v1203_v29, %v1012_v26  ;;  %v1235_v32 = vmul.f32 %v1198_v30, %v1011_v27  ;;  %2804 = vmatprep.mubr.bf16.mxu1 %v1251_v28 }
 0x2a3   : > { %v1252_v33 = vpack.c.bf16 %v1236_v31, %v1235_v32 }
 0x2a6   : > { %2805 = vmatmul.mubr.bf16.gmra.mxu1 %v1252_v33 }
 0x2ca   : > { %v2730_v34 = vpop.f32.mrf.mxu0 }
 0x2cc   : > { %v1495_v35 = vpop.f32.mrf.mxu0 }
 0x2ce   : > { %v2731_v36 = vpop.f32.mrf.mxu0 }
 0x2d0   : > { %v1498_v37 = vpop.f32.mrf.mxu0 }
 0x2d2   : > { %v2734_v38 = vpop.f32.mrf.mxu0 }
 0x2d4   : > { %v1511_v39 = vpop.f32.mrf.mxu0 }
 0x2d6   : > { %v2735_v40 = vpop.f32.mrf.mxu0 }
 0x2d8   : > { %v1514_v41 = vpop.f32.mrf.mxu0 }
 0x2da   : > { %v2738_v42 = vpop.f32.mrf.mxu0 }
 0x2dc   : > { %v3673_v43 = vpop.f32.mrf.mxu0 }
 0x2de   : > { %v3675_v44 = vpop.f32.mrf.mxu0 }
 0x2e0   : > { %v3677_v45 = vpop.f32.mrf.mxu0 }
 0x2e2   : > { %v3679_v46 = vpop.f32.mrf.mxu0 }
 0x2e4   : > { %v3681_v47 = vpop.f32.mrf.mxu0 }
 0x2e6   : > { %v3683_v48 = vpop.f32.mrf.mxu0 }
 0x2e8   : > { %v3685_v49 = vpop.f32.mrf.mxu0 }
 0x2ea   : > { %v3693_v56 = vpop.f32.mrf.mxu0 }
 0x2ec   : > { %v3703_v0 = vpop.f32.mrf.mxu0 }
 0x2ee   : > { %v3708_v11 = vpop.f32.mrf.mxu0 }
 0x2f0   : > { %v3714_v22 = vpop.f32.mrf.mxu0 }
 0x32e   : > { %v2778_v50 = vpop.f32.mrf.mxu1 }
 0x32f   : > { %v1713_v52 = vadd.f32 %v2778_v50, %v2730_v34  ;;  %v3724_v34 = vpop.f32.mrf.mxu0 }
 0x330   : > { %v1704_v53 = vpop.f32.mrf.mxu1 }
 0x331   : > { %v1840_v54 = vadd.f32 %v3690_v51, %v1713_v52  ;;  %v1705_v55 = vadd.f32 %v1704_v53, %v1495_v35 }
 0x332   : > { %v2779_v58 = vpop.f32.mrf.mxu1 }
 0x333   : > { %v1716_v59 = vadd.f32 %v2779_v58, %v2731_v36  ;;  %v1838_v60 = vadd.f32 %v3690_v51, %v1705_v55  ;;  %v1911_v62 = vmul.f32 %v3698_v57, %v1840_v54  ;;  %vm1872_vm0 = vcmp.gt.f32.partialorder %v1840_v54, 0.0 }
 0x334   : > { %v1707_v61 = vpop.f32.mrf.mxu1 }
 0x335   : > { %v1841_v63 = vadd.f32 %v3690_v51, %v1716_v59  ;;  %v1708_v1 = vadd.f32 %v1707_v61, %v1498_v37  ;;  %v1909_v5 = vmul.f32 %v3698_v57, %v1838_v60  ;;  %v1943_v8 = vsel %vm1872_vm0, %v1840_v54, %v1911_v62  ;;  %v3731_v54 = vpop.f32.mrf.mxu0 }
 0x336   : > { %v2782_v2 = vpop.f32.mrf.mxu1  ;;  %vm1870_vm2 = vcmp.gt.f32.partialorder %v1838_v60, 0.0 }
 0x337   : > { %vm1873_vm1 = vcmp.gt.f32.partialorder %v1841_v63, 0.0  ;;  %v1912_v3 = vmul.f32 %v3698_v57, %v1841_v63  ;;  %v1729_v4 = vadd.f32 %v2782_v2, %v2734_v38  ;;  %v1839_v6 = vadd.f32 %v3690_v51, %v1708_v1 }
 0x338   : > { %v1720_v7 = vpop.f32.mrf.mxu1  ;;  %v1941_v17 = vsel %vm1870_vm2, %v1838_v60, %v1909_v5 }
 0x339   : > { %v1944_v9 = vsel %vm1873_vm1, %v1841_v63, %v1912_v3  ;;  %v1721_v10 = vadd.f32 %v1720_v7, %v1511_v39  ;;  %vm1871_vm3 = vcmp.gt.f32.partialorder %v1839_v6, 0.0  ;;  %v1910_v13 = vmul.f32 %v3698_v57, %v1839_v6  ;;  %v3741_v3 = vpop.f32.mrf.mxu0 }
 0x33a   : > { %v2465_v12 = vpack.c.bf16 %v1944_v9, %v1943_v8  ;;  %v1844_v14 = vadd.f32 %v3690_v51, %v1729_v4  ;;  %v2783_v15 = vpop.f32.mrf.mxu1 }
 0x33b   : > { %v1732_v16 = vadd.f32 %v2783_v15, %v2735_v40  ;;  %v1942_v18 = vsel %vm1871_vm3, %v1839_v6, %v1910_v13  ;;  %v1842_v19 = vadd.f32 %v3690_v51, %v1721_v10  ;;  %v3748_v13 = vpop.f32.mrf.mxu0 }
 0x33c   : > { %2537 = vst [vmem:[%s3589_s23 + $0x8] sm:$0xff] %v2465_v12   ;;  %v1723_v20 = vpop.f32.mrf.mxu1  ;;  %v2460_v21 = vpack.c.bf16 %v1942_v18, %v1941_v17  ;;  %v1915_v23 = vmul.f32 %v3698_v57, %v1844_v14  ;;  %vm1876_vm4 = vcmp.gt.f32.partialorder %v1844_v14, 0.0 }
 0x33d   : > { %v1845_v24 = vadd.f32 %v3690_v51, %v1732_v16  ;;  %v1724_v25 = vadd.f32 %v1723_v20, %v1514_v41  ;;  %v1913_v28 = vmul.f32 %v3698_v57, %v1842_v19  ;;  %vm1874_vm6 = vcmp.gt.f32.partialorder %v1842_v19, 0.0 }
 0x33e   : > { %v2786_v26 = vpop.f32.mrf.mxu1  ;;  %2461 = vst [vmem:[%s3589_s23] sm:$0xff] %v2460_v21   ;;  %v1947_v35 = vsel %vm1876_vm4, %v1844_v14, %v1915_v23 }
 0x33f   : > { %v1745_v27 = vadd.f32 %v2786_v26, %v2738_v42  ;;  %vm1877_vm5 = vcmp.gt.f32.partialorder %v1845_v24, 0.0  ;;  %v1916_v29 = vmul.f32 %v3698_v57, %v1845_v24  ;;  %v1843_v30 = vadd.f32 %v3690_v51, %v1724_v25 }
 0x340   : > { %v1736_v31 = vpop.f32.mrf.mxu1  ;;  %v1945_v40 = vsel %vm1874_vm6, %v1842_v19, %v1913_v28 }
 0x341   : > { %v1848_v32 = vadd.f32 %v3690_v51, %v1745_v27  ;;  %v1737_v33 = vadd.f32 %v1736_v31, %v3673_v43  ;;  %v1948_v36 = vsel %vm1877_vm5, %v1845_v24, %v1916_v29  ;;  %vm1875_vm7 = vcmp.gt.f32.partialorder %v1843_v30, 0.0 }
 0x342   : > { %v1914_v37 = vmul.f32 %v3698_v57, %v1843_v30  ;;  %v2787_v38 = vpop.f32.mrf.mxu1  ;;  %v2475_v39 = vpack.c.bf16 %v1948_v36, %v1947_v35 }
 0x343   : > { %v1846_v42 = vadd.f32 %v3690_v51, %v1737_v33  ;;  %v1748_v50 = vadd.f32 %v2787_v38, %v3675_v44  ;;  %v1919_v43 = vmul.f32 %v3698_v57, %v1848_v32  ;;  %vm1880_vm8 = vcmp.gt.f32.partialorder %v1848_v32, 0.0 }
 0x344   : > { %v1946_v41 = vsel %vm1875_vm7, %v1843_v30, %v1914_v37  ;;  %v1739_v52 = vpop.f32.mrf.mxu1  ;;  %2539 = vst [vmem:[%s3589_s23 + $0x18] sm:$0xff] %v2475_v39  }
 0x345   : > { %v2470_v53 = vpack.c.bf16 %v1946_v41, %v1945_v40  ;;  %v1849_v55 = vadd.f32 %v3690_v51, %v1748_v50  ;;  %v1740_v58 = vadd.f32 %v1739_v52, %v3677_v45  ;;  %v1917_v61 = vmul.f32 %v3698_v57, %v1846_v42 }
 0x346   : > { %v2790_v59 = vpop.f32.mrf.mxu1  ;;  %v1951_v1 = vsel %vm1880_vm8, %v1848_v32, %v1919_v43  ;;  %vm1878_vm10 = vcmp.gt.f32.partialorder %v1846_v42, 0.0 }
 0x347   : > { %2538 = vst [vmem:[%s3589_s23 + $0x10] sm:$0xff] %v2470_v53   ;;  %v1761_v60 = vadd.f32 %v2790_v59, %v3679_v46  ;;  %vm1881_vm9 = vcmp.gt.f32.partialorder %v1849_v55, 0.0  ;;  %v1920_v44 = vmul.f32 %v3698_v57, %v1849_v55  ;;  %v1847_v62 = vadd.f32 %v3690_v51, %v1740_v58 }
 0x348   : > { %v1752_v63 = vpop.f32.mrf.mxu1  ;;  %v1949_v7 = vsel %vm1878_vm10, %v1846_v42, %v1917_v61 }
 0x349   : > { %v1753_v2 = vadd.f32 %v1752_v63, %v3681_v47  ;;  %v1952_v45 = vsel %vm1881_vm9, %v1849_v55, %v1920_v44  ;;  %vm1879_vm11 = vcmp.gt.f32.partialorder %v1847_v62, 0.0  ;;  %v1918_v4 = vmul.f32 %v3698_v57, %v1847_v62 }
 0x34a   : > { %v1852_v46 = vadd.f32 %v3690_v51, %v1761_v60  ;;  %v2791_v5 = vpop.f32.mrf.mxu1  ;;  %v2485_v6 = vpack.c.bf16 %v1952_v45, %v1951_v1 }
 0x34b   : > { %v1950_v8 = vsel %vm1879_vm11, %v1847_v62, %v1918_v4  ;;  %v1850_v9 = vadd.f32 %v3690_v51, %v1753_v2  ;;  %v1764_v10 = vadd.f32 %v2791_v5, %v3683_v48 }
 0x34c   : > { %v1755_v12 = vpop.f32.mrf.mxu1  ;;  %2541 = vst [vmem:[%s3589_s23 + $0x28] sm:$0xff] %v2485_v6   ;;  %v2480_v47 = vpack.c.bf16 %v1950_v8, %v1949_v7  ;;  %v1923_v14 = vmul.f32 %v3698_v57, %v1852_v46  ;;  %vm1884_vm12 = vcmp.gt.f32.partialorder %v1852_v46, 0.0 }
 0x34d   : > { %v1853_v15 = vadd.f32 %v3690_v51, %v1764_v10  ;;  %v1756_v16 = vadd.f32 %v1755_v12, %v3685_v49  ;;  %v1921_v19 = vmul.f32 %v3698_v57, %v1850_v9  ;;  %vm1882_vm14 = vcmp.gt.f32.partialorder %v1850_v9, 0.0  ;;  %v2754_v49 = vpop.f32.mrf.mxu0 }
 0x34e   : > { %v2794_v17 = vpop.f32.mrf.mxu1  ;;  %2540 = vst [vmem:[%s3589_s23 + $0x20] sm:$0xff] %v2480_v47   ;;  %v1955_v25 = vsel %vm1884_vm12, %v1852_v46, %v1923_v14 }
 0x34f   : > { %v1777_v18 = vadd.f32 %v2794_v17, %v3693_v56  ;;  %vm1885_vm13 = vcmp.gt.f32.partialorder %v1853_v15, 0.0  ;;  %v1924_v48 = vmul.f32 %v3698_v57, %v1853_v15  ;;  %v1851_v20 = vadd.f32 %v3690_v51, %v1756_v16  ;;  %v1591_v36 = vpop.f32.mrf.mxu0 }
 0x350   : > { %v1768_v21 = vpop.f32.mrf.mxu1  ;;  %v1953_v29 = vsel %vm1882_vm14, %v1850_v9, %v1921_v19 }
 0x351   : > { %v1856_v23 = vadd.f32 %v3690_v51, %v1777_v18  ;;  %v1769_v24 = vadd.f32 %v1768_v21, %v3703_v0  ;;  %v1956_v26 = vsel %vm1885_vm13, %v1853_v15, %v1924_v48  ;;  %vm1883_vm15 = vcmp.gt.f32.partialorder %v1851_v20, 0.0  ;;  %v2755_v43 = vpop.f32.mrf.mxu0 }
 0x352   : > { %v1922_v56 = vmul.f32 %v3698_v57, %v1851_v20  ;;  %v2795_v27 = vpop.f32.mrf.mxu1  ;;  %v2495_v28 = vpack.c.bf16 %v1956_v26, %v1955_v25 }
 0x353   : > { %v1854_v31 = vadd.f32 %v3690_v51, %v1769_v24  ;;  %v1780_v32 = vadd.f32 %v2795_v27, %v3708_v11  ;;  %v1927_v0 = vmul.f32 %v3698_v57, %v1856_v23  ;;  %vm1888_vm0 = vcmp.gt.f32.partialorder %v1856_v23, 0.0 }
 0x354   : > { %v1954_v30 = vsel %vm1883_vm15, %v1851_v20, %v1922_v56  ;;  %v1771_v33 = vpop.f32.mrf.mxu1  ;;  %2543 = vst [vmem:[%s3589_s23 + $0x38] sm:$0xff] %v2495_v28  }
 0x355   : > { %v2490_v35 = vpack.c.bf16 %v1954_v30, %v1953_v29  ;;  %v1857_v37 = vadd.f32 %v3690_v51, %v1780_v32  ;;  %v1772_v38 = vadd.f32 %v1771_v33, %v3714_v22  ;;  %v1925_v41 = vmul.f32 %v3698_v57, %v1854_v31 }
 0x356   : > { %v2798_v39 = vpop.f32.mrf.mxu1  ;;  %v1959_v52 = vsel %vm1888_vm0, %v1856_v23, %v1927_v0  ;;  %vm1886_vm2 = vcmp.gt.f32.partialorder %v1854_v31, 0.0 }
 0x357   : > { %2542 = vst [vmem:[%s3589_s23 + $0x30] sm:$0xff] %v2490_v35   ;;  %v1793_v40 = vadd.f32 %v2798_v39, %v3724_v34  ;;  %vm1889_vm1 = vcmp.gt.f32.partialorder %v1857_v37, 0.0  ;;  %v1928_v11 = vmul.f32 %v3698_v57, %v1857_v37  ;;  %v1855_v42 = vadd.f32 %v3690_v51, %v1772_v38 }
 0x358   : > { %v1784_v50 = vpop.f32.mrf.mxu1  ;;  %v1957_v60 = vsel %vm1886_vm2, %v1854_v31, %v1925_v41 }
 0x359   : > { %v1785_v53 = vadd.f32 %v1784_v50, %v3731_v54  ;;  %v1960_v55 = vsel %vm1889_vm1, %v1857_v37, %v1928_v11  ;;  %vm1887_vm3 = vcmp.gt.f32.partialorder %v1855_v42, 0.0  ;;  %v1926_v22 = vmul.f32 %v3698_v57, %v1855_v42  ;;  %v1594_v54 = vpop.f32.mrf.mxu0 }
 0x35a   : > { %v1860_v34 = vadd.f32 %v3690_v51, %v1793_v40  ;;  %v2799_v58 = vpop.f32.mrf.mxu1  ;;  %v2505_v59 = vpack.c.bf16 %v1960_v55, %v1959_v52 }
 0x35b   : > { %v1958_v61 = vsel %vm1887_vm3, %v1855_v42, %v1926_v22  ;;  %v1858_v44 = vadd.f32 %v3690_v51, %v1785_v53  ;;  %v1796_v62 = vadd.f32 %v2799_v58, %v3741_v3  ;;  %v2758_v10 = vpop.f32.mrf.mxu0 }
 0x35c   : > { %v1787_v63 = vpop.f32.mrf.mxu1  ;;  %2545 = vst [vmem:[%s3589_s23 + $0x48] sm:$0xff] %v2505_v59   ;;  %v2500_v1 = vpack.c.bf16 %v1958_v61, %v1957_v60  ;;  %v1931_v2 = vmul.f32 %v3698_v57, %v1860_v34  ;;  %vm1892_vm4 = vcmp.gt.f32.partialorder %v1860_v34, 0.0 }
 0x35d   : > { %v1861_v45 = vadd.f32 %v3690_v51, %v1796_v62  ;;  %v1788_v4 = vadd.f32 %v1787_v63, %v3748_v13  ;;  %v1929_v6 = vmul.f32 %v3698_v57, %v1858_v44  ;;  %vm1890_vm6 = vcmp.gt.f32.partialorder %v1858_v44, 0.0  ;;  %v1607_v24 = vpop.f32.mrf.mxu0 }
 0x35e   : > { %v2802_v46 = vpop.f32.mrf.mxu1  ;;  %2544 = vst [vmem:[%s3589_s23 + $0x40] sm:$0xff] %v2500_v1   ;;  %v1963_v47 = vsel %vm1892_vm4, %v1860_v34, %v1931_v2 }
 0x35f   : > { %v1809_v5 = vadd.f32 %v2802_v46, %v2754_v49  ;;  %vm1893_vm5 = vcmp.gt.f32.partialorder %v1861_v45, 0.0  ;;  %v1932_v7 = vmul.f32 %v3698_v57, %v1861_v45  ;;  %v1859_v3 = vadd.f32 %v3690_v51, %v1788_v4  ;;  %v2759_v32 = vpop.f32.mrf.mxu0 }
 0x360   : > { %v1800_v8 = vpop.f32.mrf.mxu1  ;;  %v1961_v17 = vsel %vm1890_vm6, %v1858_v44, %v1929_v6 }
 0x361   : > { %v1864_v9 = vadd.f32 %v3690_v51, %v1809_v5  ;;  %v1801_v12 = vadd.f32 %v1800_v8, %v1591_v36  ;;  %v1964_v13 = vsel %vm1893_vm5, %v1861_v45, %v1932_v7  ;;  %vm1891_vm7 = vcmp.gt.f32.partialorder %v1859_v3, 0.0  ;;  %v1610_v52 = vpop.f32.mrf.mxu0 }
 0x362   : > { %v1930_v14 = vmul.f32 %v3698_v57, %v1859_v3  ;;  %v2803_v15 = vpop.f32.mrf.mxu1  ;;  %v2515_v16 = vpack.c.bf16 %v1964_v13, %v1963_v47 }
 0x363   : > { %v1862_v19 = vadd.f32 %v3690_v51, %v1801_v12  ;;  %v1812_v48 = vadd.f32 %v2803_v15, %v2755_v43  ;;  %v1935_v23 = vmul.f32 %v3698_v57, %v1864_v9  ;;  %vm1896_vm8 = vcmp.gt.f32.partialorder %v1864_v9, 0.0 }
 0x364   : > { %v1962_v18 = vsel %vm1891_vm7, %v1859_v3, %v1930_v14  ;;  %v1803_v20 = vpop.f32.mrf.mxu1  ;;  %2547 = vst [vmem:[%s3589_s23 + $0x58] sm:$0xff] %v2515_v16  }
 0x365   : > { %v2510_v21 = vpack.c.bf16 %v1962_v18, %v1961_v17  ;;  %v1865_v49 = vadd.f32 %v3690_v51, %v1812_v48  ;;  %v1804_v25 = vadd.f32 %v1803_v20, %v1594_v54  ;;  %v1933_v27 = vmul.f32 %v3698_v57, %v1862_v19 }
 0x366   : > { %v2806_v26 = vpop.f32.mrf.mxu1  ;;  %v1967_v31 = vsel %vm1896_vm8, %v1864_v9, %v1935_v23  ;;  %vm1894_vm10 = vcmp.gt.f32.partialorder %v1862_v19, 0.0 }
 0x367   : > { %2546 = vst [vmem:[%s3589_s23 + $0x50] sm:$0xff] %v2510_v21   ;;  %v1825_v56 = vadd.f32 %v2806_v26, %v2758_v10  ;;  %vm1897_vm9 = vcmp.gt.f32.partialorder %v1865_v49, 0.0  ;;  %v1936_v28 = vmul.f32 %v3698_v57, %v1865_v49  ;;  %v1863_v29 = vadd.f32 %v3690_v51, %v1804_v25 }
 0x368   : > { %v1816_v30 = vpop.f32.mrf.mxu1  ;;  %v1965_v39 = vsel %vm1894_vm10, %v1862_v19, %v1933_v27 }
 0x369   : > { %v1817_v33 = vadd.f32 %v1816_v30, %v1607_v24  ;;  %v1968_v35 = vsel %vm1897_vm9, %v1865_v49, %v1936_v28  ;;  %vm1895_vm11 = vcmp.gt.f32.partialorder %v1863_v29, 0.0  ;;  %v1934_v0 = vmul.f32 %v3698_v57, %v1863_v29 }
 0x36a   : > { %v1868_v36 = vadd.f32 %v3690_v51, %v1825_v56  ;;  %v2807_v37 = vpop.f32.mrf.mxu1  ;;  %v2525_v38 = vpack.c.bf16 %v1968_v35, %v1967_v31 }
 0x36b   : > { %v1966_v40 = vsel %vm1895_vm11, %v1863_v29, %v1934_v0  ;;  %v1866_v41 = vadd.f32 %v3690_v51, %v1817_v33  ;;  %v1828_v11 = vadd.f32 %v2807_v37, %v2759_v32 }
 0x36c   : > { %v1819_v42 = vpop.f32.mrf.mxu1  ;;  %2549 = vst [vmem:[%s3589_s23 + $0x68] sm:$0xff] %v2525_v38   ;;  %v2520_v50 = vpack.c.bf16 %v1966_v40, %v1965_v39  ;;  %v1939_v53 = vmul.f32 %v3698_v57, %v1868_v36  ;;  %vm1900_vm12 = vcmp.gt.f32.partialorder %v1868_v36, 0.0 }
 0x36d   : > { %v1869_v43 = vadd.f32 %v3690_v51, %v1828_v11  ;;  %v1820_v55 = vadd.f32 %v1819_v42, %v1610_v52  ;;  %v1937_v22 = vmul.f32 %v3698_v57, %v1866_v41  ;;  %vm1898_vm14 = vcmp.gt.f32.partialorder %v1866_v41, 0.0 }
 0x36e   : > { %2548 = vst [vmem:[%s3589_s23 + $0x60] sm:$0xff] %v2520_v50   ;;  %v1971_v59 = vsel %vm1900_vm12, %v1868_v36, %v1939_v53 }
 0x36f   : > { %vm1901_vm13 = vcmp.gt.f32.partialorder %v1869_v43, 0.0  ;;  %v1940_v34 = vmul.f32 %v3698_v57, %v1869_v43  ;;  %v1867_v58 = vadd.f32 %v3690_v51, %v1820_v55  ;;  %v1969_v62 = vsel %vm1898_vm14, %v1866_v41, %v1937_v22 }
 0x371   : > { %v1972_v60 = vsel %vm1901_vm13, %v1869_v43, %v1940_v34  ;;  %vm1899_vm15 = vcmp.gt.f32.partialorder %v1867_v58, 0.0  ;;  %v1938_v61 = vmul.f32 %v3698_v57, %v1867_v58 }
 0x372   : > { %v2535_v44 = vpack.c.bf16 %v1972_v60, %v1971_v59 }
 0x373   : > { %v1970_v63 = vsel %vm1899_vm15, %v1867_v58, %v1938_v61 }
 0x374   : > { %2551 = vst [vmem:[%s3589_s23 + $0x78] sm:$0xff] %v2535_v44   ;;  %v2530_v1 = vpack.c.bf16 %v1970_v63, %v1969_v62 }
 0x376   : > { %2550 = vst [vmem:[%s3589_s23 + $0x70] sm:$0xff] %v2530_v1  }
 0x377 PF: > { %s3968_s0 = sld [smem:[#allocation21_spill]]  ;;  %s2147_s8 = sshll.u32 %s3589_s23, 4  ;;  %s3815_s8 = int_to_ptr.vmem [resolvable:$true] %s2147_s8 }
 0x378   : > { %s3970_s22 = sld [smem:[#allocation28_spill]]  ;;  %s3819_s19 = scalar_lea.sflag [#allocation6], %s439_s21 }
 0x379   : > { %s3971_s25 = sld [smem:[#allocation37_spill]]  ;;  %s3122_s27 = scalar_lea.vmem %s3815_s8, 2048 }
 0x37a   : > { %p3123_p7 = scmp.ne.s32.totalorder %s3815_s8, %s3122_s27  ;;  %s3282_s14 = smov [#allocation12]  }
 0x37b   : > { %s3126_s20 = sshll.u32 %s3282_s14, 4  ;;  %s3127_s20 = int_to_ptr.vmem [resolvable:$false] %s3126_s20 }
 0x37c   : > { %s3128_s13 = scalar_lea.vmem %s3127_s20, 4096  ;;  %p3129_p0 = scmp.lt.s32.totalorder %s3815_s8, %s3127_s20 }
 0x37d   : > { %s2456_s11 = sshll.u32 %s3968_s0, 11  ;;  %p3130_p11 = scmp.lt.s32.totalorder %s3128_s13, %s3122_s27 }
 0x37e   : > { %p3972_p6 = scmp.ne.s32.totalorder %s3970_s22, 0 }
 0x37f   : > { %s3812_s7 = scalar_lea.hbm %s3971_s25, %s2456_s11  ;;  %p3131_p4 = por %p3130_p11, %p3129_p0 }
 0x380   : > { %p3124_p12 = pnand %p3123_p7, %p3972_p6 }
 0x382   : > { %p3125_p3 = pneg %p3124_p12 }
 0x384   : > { %p3132_p1 = pnand %p3131_p4, %p3125_p3 }
 0x386   : > { %3135 = shalt.err (!%p3132_p1)
}
 0x387   : > { %s3136_s21 = scalar_lea.hbm %s3812_s7, 2048  ;;  %s3140_s1 = scalar_lea.hbm %s3971_s25, 4096 }
 0x388   : > { %p3137_p2 = scmp.ne.s32.totalorder %s3812_s7, %s3136_s21  ;;  %p3141_p5 = scmp.lt.s32.totalorder %s3812_s7, %s3971_s25 }
 0x389   : > { %p3142_p8 = scmp.lt.s32.totalorder %s3140_s1, %s3136_s21 }
 0x38a   : > { %p3138_p10 = pnand %p3137_p2, %p3972_p6 }
 0x38b   : > { %p3143_p9 = por %p3142_p8, %p3141_p5 }
 0x38c   : > { %p3139_p13 = pneg %p3138_p10 }
 0x38e   : > { %p3144_p7 = pnand %p3143_p9, %p3139_p13 }
 0x390   : > { %3147 = shalt.err (!%p3144_p7)
}
 0x391   : > { %s3283_s24 = smov 64   ;;  %s3284_s2 = smov 4  }
 0x392   : > { %2836 = dma.vmem_to_hbm [thread:$0]  (%p3972_p6), %s3815_s8, 2048, %s3812_s7, %s3819_s19, %s3283_s24, %s3283_s24, %s3284_s2  }
 0x393 PF: > { %s3973_s30 = sld [smem:[#allocation18_spill]]  ;;  %p2853_p12 = scmp.ge.s32.totalorder %s3270_s17, 2 }
 0x394   : > { %s3974_s0 = sld [smem:[#allocation29_spill]] }
 0x399   : > { %s2162_s26 = sand.u32 1, %s3973_s30  }
 0x39a   : > { %p3975_p3 = scmp.ne.s32.totalorder %s3974_s0, 0  ;;  %s2163_s11 = scalar_lea.sflag [#allocation6], %s2162_s26 }
 0x39c   : > { %p2846_p0 = pnand %p2853_p12, %p3975_p3 }
 0x39e   : > { %p2847_p11 = pneg %p2846_p0 }
 0x3a0   : > { %3217 = dma.done.wait (%p2847_p11), %s2163_s11, 2048  }
 0x3a1   : > { %3219 = vsyncadd (%p2847_p11), %s2163_s11, 4294965248  ;;  %s28_s17 = sadd.s32 1, %s3270_s17   ;;  %s3977_s27 = sld [smem:[#allocation19_spill]] }
 0x3a2   : > { %p3847_p4 = scmp.ge.s32.totalorder %s28_s17, 6   ;;  %s3978_s22 = sld [smem:[#allocation26_spill]] }
 0x3a3   : > { %s3979_s6 = sld [smem:[#allocation24_spill]]  ;;  %s3983_s28 = smov %s3230_s29 }
 0x3a4   : > { %s3980_s7 = sld [smem:[#allocation25_spill]]  ;;  %s3985_s30 = smov %s3238_s9 }
 0x3a5   : > { %s3981_s8 = sld [smem:[#allocation22_spill]]  ;;  %s3986_s9 = smov %s3242_s10 }
 0x3a6   : > { %s3982_s19 = sld [smem:[#allocation23_spill]]  ;;  %s3988_s11 = smov %s3250_s12 }
 0x3a7   : > { %s3990_s13 = smov %s3262_s15  ;;  %s3991_s14 = smov %s3266_s16 }
 0x3a8   : > { %s3984_s29 = smov %s3978_s22  ;;  %27 = sbr.rel (!%p3847_p4) target bundleno = 22 (0x16), region = 160 }
 0x3a9   : > { %s3987_s10 = smov %s3979_s6 }
 0x3aa   : > { %s3989_s12 = smov %s3980_s7 }
 0x3ab   : > { %s3992_s15 = smov %s3981_s8 }
 0x3ac   : > { %s3993_s16 = smov %s3982_s19 }
 0x3ad   :  { %2168 = vsyncpa [#allocation5], 1 }
 0x3ae   :  { %2170 = vsyncpa [#allocation5 + $0x1], 1 }
 0x3af   :  { %2171 = vsyncpa [#allocation8], 1 }
 0x3b0   :  { %2173 = vsyncpa [#allocation8 + $0x1], 1 }
 0x3b1   :  { %2174 = vsyncpa [#allocation11], 1 }
 0x3b2   :  { %2175 = vsyncpa [#allocation6], 1 }
 0x3b3   :  { %2177 = vsyncpa [#allocation6 + $0x1], 1 }

</bundles_post_ra>
